<compile_context>
chip_gen: v6e
topology: v6e:2x2x1
jax: 0.10.0
libtpu: 0.0.40
codegen_flags: <defaults>
</compile_context>

<pallas_src>
import jax
import jax.numpy as jnp
from jax.experimental import pallas as pl
from jax.experimental.pallas import tpu as pltpu


# ---------------------------------------------------------------------------
# Kernels
# ---------------------------------------------------------------------------
def _addmm_kernel_acc(x1_ref, a_ref, b_ref, out_ref, acc_ref):
    """Multi-step K reduction.  The f32 accumulator is initialised with the
    bias tile at k == 0, so the epilogue is a plain cast + store."""
    k = pl.program_id(2)

    @pl.when(k == 0)
    def _():
        acc_ref[...] = x1_ref[...].astype(jnp.float32)

    acc_ref[...] += jnp.dot(a_ref[...], b_ref[...],
                            preferred_element_type=jnp.float32)

    @pl.when(k == pl.num_programs(2) - 1)
    def _():
        out_ref[...] = acc_ref[...].astype(out_ref.dtype)


def _addmm_kernel_noacc(x1_ref, a_ref, b_ref, out_ref):
    """Single K step: no accumulator scratch / VMEM round-trip, direct store."""
    out_ref[...] = (jnp.dot(a_ref[...], b_ref[...],
                            preferred_element_type=jnp.float32)
                    + x1_ref[...].astype(jnp.float32)).astype(out_ref.dtype)


# ---------------------------------------------------------------------------
# Tiling / VMEM planning helpers
# ---------------------------------------------------------------------------
def _pick_tile(dim: int, pref: int) -> int:
    """Largest tile <= pref that divides `dim`, preferring multiples of 256
    (full MXU width on v6e/v7x), then 128 (lane width), then any divisor."""
    if dim <= pref:
        return dim
    for step in (256, 128, 8, 1):
        t = (pref // step) * step
        while t >= step:
            if dim % t == 0:
                return t
            t -= step
    return dim


def _vmem_capacity_bytes() -> int:
    try:
        return int(pltpu.get_tpu_info().vmem_capacity_bytes)
    except Exception:
        return 64 << 20            # conservative: v7x physical VMEM per core


def _vmem_footprint(tm, tn, tk, in_isz, out_isz, use_acc):
    # Pallas double-buffers every auto-pipelined operand.
    b = 2 * tm * tk * in_isz            # lhs
    b += 2 * tk * tn * in_isz           # rhs
    b += 2 * tm * tn * out_isz          # bias
    b += 2 * tm * tn * out_isz          # out
    if use_acc:
        b += tm * tn * 4                # f32 accumulator scratch
    return b


# ---------------------------------------------------------------------------
# Wrapper
# ---------------------------------------------------------------------------
def addmm(x1, x2, inp, *, tm=512, tn=512, tk=512,
          cast_inputs_to_bf16=False, donate_x1=False):
    """out = inp @ x2 + x1   (torch.mm + add, i.e. addmm).

    inp: (M, K), x2: (K, N), x1: (M, N); output dtype follows x1.
    """
    M, K = inp.shape
    K2, N = x2.shape
    assert K == K2, "contraction dims must match"
    assert x1.shape == (M, N), "additive term must match (M, N)"

    if cast_inputs_to_bf16:
        inp = inp.astype(jnp.bfloat16)
        x2 = x2.astype(jnp.bfloat16)

    out_dtype = x1.dtype
    in_isz = jnp.dtype(inp.dtype).itemsize
    out_isz = jnp.dtype(out_dtype).itemsize

    tm = _pick_tile(M, tm)
    tn = _pick_tile(N, tn)
    tk = _pick_tile(K, tk)

    # v7x has 2 TensorCores per chip: guarantee >= 2 parallel (i, j) output
    # blocks so both cores get work (harmless extra grid steps on v5e/v6e).
    if (M // tm) * (N // tn) == 1:
        if tn % 2 == 0 and tn // 2 >= 128:
            tn //= 2
        elif tm % 2 == 0 and tm // 2 >= 8:
            tm //= 2

    # Fit the double-buffered working set inside a generation-aware VMEM
    # budget (70% of physical, leaving headroom for Mosaic internal scratch),
    # shrinking the reduction tile first, then n, then m.  Halving a divisor
    # tile keeps divisibility of the full dim.
    vmem_cap = _vmem_capacity_bytes()
    budget = int(vmem_cap * 0.70)

    def fits(tm_, tn_, tk_):
        return _vmem_footprint(tm_, tn_, tk_, in_isz, out_isz,
                               (K // tk_) > 1) <= budget

    while not fits(tm, tn, tk) and tk % 2 == 0 and tk // 2 >= 128:
        tk //= 2
    while not fits(tm, tn, tk) and tn % 2 == 0 and tn // 2 >= 128:
        tn //= 2
    while not fits(tm, tn, tk) and tm % 2 == 0 and tm // 2 >= 8:
        tm //= 2

    grid = (M // tm, N // tn, K // tk)
    single_k = grid[2] == 1
    kernel = _addmm_kernel_noacc if single_k else _addmm_kernel_acc
    scratch = [] if single_k else [pltpu.VMEM((tm, tn), jnp.float32)]

    needed = _vmem_footprint(tm, tn, tk, in_isz, out_isz, not single_k)
    vmem_limit = min(int(vmem_cap * 0.85), max(needed + (16 << 20), 32 << 20))

    cost = pl.CostEstimate(
        flops=2 * M * N * K,
        transcendentals=0,
        bytes_accessed=(inp.size * in_isz + x2.size * in_isz
                        + x1.size * out_isz + M * N * out_isz),
    )

    return pl.pallas_call(
        kernel,
        out_shape=jax.ShapeDtypeStruct((M, N), out_dtype),
        grid_spec=pltpu.PrefetchScalarGridSpec(
            num_scalar_prefetch=0,
            grid=grid,
            in_specs=[
                # bias: independent of k -> its tile is DMA'd once per (i, j)
                pl.BlockSpec((tm, tn), lambda i, j, k: (i, j)),   # x1
                pl.BlockSpec((tm, tk), lambda i, j, k: (i, k)),   # inp (lhs)
                pl.BlockSpec((tk, tn), lambda i, j, k: (k, j)),   # x2  (rhs)
            ],
            out_specs=pl.BlockSpec((tm, tn), lambda i, j, k: (i, j)),
            scratch_shapes=scratch,
        ),
        compiler_params=pltpu.CompilerParams(
            dimension_semantics=("parallel", "parallel", "arbitrary"),
            vmem_limit_bytes=vmem_limit,
        ),
        # Alias only when the caller actually donates x1; an un-donated alias
        # makes XLA insert a defensive (M, N) copy, negating the saving.
        input_output_aliases={0: 0} if donate_x1 else {},
        cost_estimate=cost,
    )(x1, inp, x2)


if __name__ == "__main__":
    key = jax.random.PRNGKey(0)
    k1, k2, k3 = jax.random.split(key, 3)

    # ---- multi-K-step path: exercises bias-in-accumulator + epilogue -------
    M, K, N = 256, 1024, 512
    inp = jax.random.normal(k1, (M, K), dtype=jnp.float32)
    x2 = jax.random.normal(k2, (K, N), dtype=jnp.float32)
    x1 = jax.random.normal(k3, (M, N), dtype=jnp.float32)

    ref = jnp.dot(inp, x2, precision=jax.lax.Precision.HIGHEST) + x1
    ref = jax.block_until_ready(ref)

    out = addmm(x1, x2, inp)          # auto-tiled: grid (1, 2, 2) on f32
    out = jax.block_until_ready(out)

    assert out.shape == (M, N) and out.dtype == x1.dtype
    assert jnp.allclose(out, ref, atol=2e-2, rtol=2e-2), \
        float(jnp.max(jnp.abs(out - ref)))

    # ---- single-K-step path: scratch-free kernel, direct store -------------
    M2, K2, N2 = 128, 256, 256
    a = jax.random.normal(k1, (M2, K2), dtype=jnp.float32)
    b = jax.random.normal(k2, (K2, N2), dtype=jnp.float32)
    c = jax.random.normal(k3, (M2, N2), dtype=jnp.float32)

    ref2 = jnp.dot(a, b, precision=jax.lax.Precision.HIGHEST) + c
    ref2 = jax.block_until_ready(ref2)

    out2 = jax.block_until_ready(addmm(c, b, a))
    assert out2.shape == (M2, N2) and out2.dtype == c.dtype
    assert jnp.allclose(out2, ref2, atol=2e-2, rtol=2e-2), \
        float(jnp.max(jnp.abs(out2 - ref2)))

    print("KERNEL_OK")
</pallas_src>

<mosaic_0001>
module attributes {stable_mosaic.version = 11 : i64} {
  func.func @_addmm_kernel_acc(%arg0: i32, %arg1: i32, %arg2: i32, %arg3: memref<256x256xf32, #tpu.memory_space<vmem>>, %arg4: memref<256x512xf32, #tpu.memory_space<vmem>>, %arg5: memref<512x256xf32, #tpu.memory_space<vmem>>, %arg6: memref<256x256xf32, #tpu.memory_space<vmem>>, %arg7: memref<256x256xf32, #tpu.memory_space<vmem>>) attributes {dimension_semantics = [#tpu.dimension_semantics<parallel>, #tpu.dimension_semantics<parallel>, #tpu.dimension_semantics<arbitrary>], iteration_bounds = array<i64: 1, 2, 2>, scalar_prefetch = 0 : i64, scratch_operands = 1 : i64, tpu.core_type = #tpu.core_type<tc>, window_params = [{transform_indices = @transform_0, window_bounds = array<i64: 256, 256>}, {transform_indices = @transform_1, window_bounds = array<i64: 256, 512>}, {transform_indices = @transform_2, window_bounds = array<i64: 512, 256>}, {transform_indices = @transform_3, window_bounds = array<i64: 256, 256>}]} {
    %c0_i32 = arith.constant 0 : i32
    %0 = arith.cmpi eq, %arg2, %c0_i32 : i32
    %1 = arith.extui %0 : i1 to i32
    %c0_i32_0 = arith.constant 0 : i32
    %2 = arith.cmpi ne, %1, %c0_i32_0 : i32
    scf.if %2 {
      %c0_9 = arith.constant 0 : index
      %c0_10 = arith.constant 0 : index
      %12 = vector.load %arg3[%c0_9, %c0_10] : memref<256x256xf32, #tpu.memory_space<vmem>>, vector<256x256xf32>
      %c0_11 = arith.constant 0 : index
      %c0_12 = arith.constant 0 : index
      %13 = vector.load %arg7[%c0_11, %c0_12] : memref<256x256xf32, #tpu.memory_space<vmem>>, vector<256x256xf32>
      tpu.vector_store %arg7[%c0_11, %c0_12], %12 {strides = array<i32>} : memref<256x256xf32, #tpu.memory_space<vmem>>, vector<256x256xf32>,
    } else {
    }
    %c0 = arith.constant 0 : index
    %c0_1 = arith.constant 0 : index
    %3 = vector.load %arg7[%c0, %c0_1] : memref<256x256xf32, #tpu.memory_space<vmem>>, vector<256x256xf32>
    %c0_2 = arith.constant 0 : index
    %c0_3 = arith.constant 0 : index
    %4 = vector.load %arg4[%c0_2, %c0_3] : memref<256x512xf32, #tpu.memory_space<vmem>>, vector<256x512xf32>
    %c0_4 = arith.constant 0 : index
    %c0_5 = arith.constant 0 : index
    %5 = vector.load %arg5[%c0_4, %c0_5] : memref<512x256xf32, #tpu.memory_space<vmem>>, vector<512x256xf32>
    %cst = arith.constant dense<0.000000e+00> : vector<256x256xf32>
    %6 = tpu.matmul %4, %5, %cst {dimension_numbers = #tpu.dot_dimension_numbers<[1], [0], [0], [1], [0, 0, 1, 1], [], []>} : vector<256x512xf32>, vector<512x256xf32>, vector<256x256xf32> -> vector<256x256xf32>
    %7 = arith.addf %3, %6 : vector<256x256xf32>
    %c0_6 = arith.constant 0 : index
    %c0_7 = arith.constant 0 : index
    %8 = vector.load %arg7[%c0_6, %c0_7] : memref<256x256xf32, #tpu.memory_space<vmem>>, vector<256x256xf32>
    tpu.vector_store %arg7[%c0_6, %c0_7], %7 {strides = array<i32>} : memref<256x256xf32, #tpu.memory_space<vmem>>, vector<256x256xf32>,
    %c1_i32 = arith.constant 1 : i32
    %9 = arith.cmpi eq, %arg2, %c1_i32 : i32
    %10 = arith.extui %9 : i1 to i32
    %c0_i32_8 = arith.constant 0 : i32
    %11 = arith.cmpi ne, %10, %c0_i32_8 : i32
    scf.if %11 {
      %c0_9 = arith.constant 0 : index
      %c0_10 = arith.constant 0 : index
      %12 = vector.load %arg7[%c0_9, %c0_10] : memref<256x256xf32, #tpu.memory_space<vmem>>, vector<256x256xf32>
      %c0_11 = arith.constant 0 : index
      %c0_12 = arith.constant 0 : index
      %13 = vector.load %arg6[%c0_11, %c0_12] : memref<256x256xf32, #tpu.memory_space<vmem>>, vector<256x256xf32>
      tpu.vector_store %arg6[%c0_11, %c0_12], %12 {strides = array<i32>} : memref<256x256xf32, #tpu.memory_space<vmem>>, vector<256x256xf32>,
    } else {
    }
    return
  }
  func.func @transform_0(%arg0: i32, %arg1: i32, %arg2: i32) -> (i32, i32) {
    %c0_i32 = arith.constant 0 : i32
    return %arg0, %arg1 : i32, i32
  }
  func.func @transform_1(%arg0: i32, %arg1: i32, %arg2: i32) -> (i32, i32) {
    %c0_i32 = arith.constant 0 : i32
    return %arg0, %arg2 : i32, i32
  }
  func.func @transform_2(%arg0: i32, %arg1: i32, %arg2: i32) -> (i32, i32) {
    %c0_i32 = arith.constant 0 : i32
    return %arg2, %arg1 : i32, i32
  }
  func.func @transform_3(%arg0: i32, %arg1: i32, %arg2: i32) -> (i32, i32) {
    %c0_i32 = arith.constant 0 : i32
    return %arg0, %arg1 : i32, i32
  }
}

</mosaic_0001>

<bundles_post_ra>
// kernel: tpu_custom_call.1
= control target key start
LH: loop header
LB: loop body
LE: loop exit
PB: predicated region body
PF: predicated region fallthrough
CT: control target
= control target key end

     0   :  { %s2876_s0 = inlined_call_operand.hbm [shape: f32[256,512], index: 0, kind: input, shape index: {}]   ;;  %s2877_s1 = inlined_call_operand.hbm [shape: f32[256,1024], index: 1, kind: input, shape index: {}]   ;;  %s2878_s2 = inlined_call_operand.hbm [shape: f32[1024,512], index: 2, kind: input, shape index: {}]   ;;  %s2879_s3 = inlined_call_operand.hbm [shape: f32[256,512], index: 3, kind: output, shape index: {}]  }
   0x1   :  { %2897 = sst [smem:[#allocation23_spill]] %s2876_s0 }
   0x2   :  { %2898 = sst [smem:[#allocation24_spill]] %s2877_s1 }
   0x3   :  { %2899 = sst [smem:[#allocation25_spill]] %s2879_s3 }
   0x4   :  { %8 = vsyncpa [#allocation4], 0 }
   0x5   :  { %10 = vsyncpa [#allocation4 + $0x1], 0 }
   0x6   :  { %11 = vsyncpa [#allocation7], 0 }
   0x7   :  { %13 = vsyncpa [#allocation7 + $0x1], 0 }
   0x8   :  { %14 = vsyncpa [#allocation5], 0 }
   0x9   :  { %16 = vsyncpa [#allocation5 + $0x1], 0  ;;  %s2140_s12 = smov 0   ;;  %s2142_s13 = smov 0  }
   0xa   :  { %s2144_s14 = smov 0   ;;  %s2146_s15 = smov 0  }
   0xb   :  { %s2148_s16 = smov 0   ;;  %s2150_s17 = smov 0  }
   0xc   :  { %s2152_s18 = smov 0   ;;  %s2154_s19 = smov 0  }
   0xd   :  { %s2156_s20 = smov 0   ;;  %s2158_s21 = smov 0  }
   0xe   :  { %s2160_s22 = smov 0   ;;  %s2162_s23 = smov 0  }
   0xf   :  { %s2164_s24 = smov 0   ;;  %s2166_s25 = smov 0  }
  0x10 LB: > { %2900 = sst [smem:[#allocation14_spill]] %s2070_s16  ;;  %s2209_s26 = sadd.s32 4294967295, %s2106_s25   ;;  %s2106_s25 = sphi %s2166_s25, %s22_s25   ;;  %s2102_s24 = sphi %s2164_s24, %s2954_s24   ;;  %s2098_s23 = sphi %s2162_s23, %s2953_s23   ;;  %s2094_s22 = sphi %s2160_s22, %s2952_s22   ;;  %s2090_s21 = sphi %s2158_s21, %s2951_s21   ;;  %s2086_s20 = sphi %s2156_s20, %s2950_s20   ;;  %s2082_s19 = sphi %s2154_s19, %s2949_s19   ;;  %s2078_s18 = sphi %s2152_s18, %s2948_s18   ;;  %s2074_s17 = sphi %s2150_s17, %s2942_s17   ;;  %s2070_s16 = sphi %s2148_s16, %s2941_s16   ;;  %s2066_s15 = sphi %s2146_s15, %s2940_s15   ;;  %s2062_s14 = sphi %s2144_s14, %s2947_s14   ;;  %s2058_s13 = sphi %s2142_s13, %s2946_s13   ;;  %s2054_s12 = sphi %s2140_s12, %s2945_s12  }
  0x11   : > { %2901 = sst [smem:[#allocation15_spill]] %s2074_s17  ;;  %s34_s27 = sadd.s32 1, %s2098_s23 }
  0x12   : > { %2902 = sst [smem:[#allocation16_spill]] %s2090_s21  ;;  %p2212_p0 = scmp.ge.s32.totalorder %s34_s27, 2 }
  0x13   : > { %2903 = sst [smem:[#allocation17_spill]] %s2094_s22  ;;  %p2882_p1 = scmp.eq.s32.totalorder %s2106_s25, 0 }
  0x14   : > { %p2883_p2 = scmp.eq.s32.totalorder %s2209_s26, 0  ;;  %s78_s29 = sadd.s32 1, %s2074_s17 }
  0x15   : > { %s2956_s27 = smov (%p2212_p0, %s34_s27), 0  ;;  %p85_p3 = scmp.ne.s32.totalorder %s2074_s17, %s2070_s16 }
  0x16   : > { %2905 = sst [smem:[#allocation18_spill]] %s2956_s27  ;;  %p91_p4 = scmp.ne.s32.totalorder %s2070_s16, %s2066_s15 }
  0x17   : > { %s2228_s30 = ssub.s32 %s2098_s23, %s2956_s27  ;;  %p87_p6 = por %p85_p3, %p2882_p1 }
  0x18   : > { %p76_p5 = scmp.eq.s32.totalorder %s2228_s30, 0  ;;  %p2235_p7 = por %p91_p4, %p2883_p2 }
  0x19   : > { %p1748_p8 = scmp.lt.s32.totalorder %s2106_s25, 4  ;;  %s195_s6 = sand.u32 1, %s2106_s25  }
  0x1a   : > { %s2906_s4 = scalar_select %p2235_p7, 1, 0 }
  0x1b   : > { %s2241_s5 = scalar_select %p76_p5, %s2074_s17, %s78_s29  }
  0x1c   : > { %2907 = sst [smem:[#allocation19_spill]] %s2906_s4  ;;  %s197_s7 = sand.u32 1, %s2074_s17  }
  0x1d   : > { %2908 = sst [smem:[#allocation20_spill]] %s2241_s5  ;;  %s1702_s8 = sshll.u32 %s197_s7, 10 }
  0x1e   : > { %s1723_s9 = sshll.u32 %s2098_s23, 9  ;;  %s2909_s1 = sld [smem:[#allocation24_spill]] }
  0x1f   : > { %s199_s27 = scalar_lea.vmem [#allocation6], %s1702_s8  ;;  %p2251_p9 = pnand %p1748_p8, %p87_p6 }
  0x20   : > { %s209_s3 = sshll.u32 %s199_s27, 4  ;;  %s2255_s21 = scalar_lea.sflag [#allocation7], %s195_s6  ;;  %s210_s3 = int_to_ptr.vmem [resolvable:$true] %s209_s3 }
  0x21   : > { %p1872_p10 = pneg %p2251_p9  ;;  %s1883_s29 = scalar_lea.vmem %s210_s3, 16384 }
  0x22   : > { %p1884_p11 = scmp.ne.s32.totalorder %s210_s3, %s1883_s29  ;;  %s2108_s7 = smov [#allocation6]  }
  0x23   : > { %s1888_s10 = sshll.u32 %s2108_s7, 4  ;;  %s1889_s10 = int_to_ptr.vmem [resolvable:$false] %s1888_s10 }
  0x24   : > { %s208_s15 = scalar_lea.hbm %s2909_s1, %s1723_s9  ;;  %p1886_p12 = pnand %p1884_p11, %p1872_p10 }
  0x25   : > { %s1890_s8 = scalar_lea.vmem %s1889_s10, 32768  ;;  %p1891_p3 = scmp.lt.s32.totalorder %s210_s3, %s1889_s10 }
  0x26   : > { %p1887_p13 = pneg %p1886_p12  ;;  %p1892_p4 = scmp.lt.s32.totalorder %s1890_s8, %s1883_s29 }
  0x28   : > { %p1893_p5 = por %p1892_p4, %p1891_p3 }
  0x2a   : > { %p1894_p6 = pnand %p1893_p5, %p1887_p13 }
  0x2c   : > { %1897 = shalt.err (!%p1894_p6)
}
  0x2d   : > { %s2109_s27 = smov 1024   ;;  %s2884_s6 = smov 512  }
  0x2e   : > { %s2111_s9 = smov 32   ;;  %p1710_p10 = scmp.ge.s32.totalorder %s2106_s25, 1 }
  0x2f   : > { %1740 = dma.hbm_to_vmem [thread:$0]  (!%p2251_p9), %s208_s15, 16384, %s210_s3, %s2255_s21, %s2109_s27, %s2884_s6, %s2111_s9  }
  0x30   : > { %p241_p11 = scmp.lt.s32.totalorder %s2106_s25, 5  ;;  %s1696_s29 = sadd.s32 4294967294, %s2106_s25  }
  0x31   : > { %s37_s7 = sadd.s32 1, %s2102_s24  ;;  %s50_s10 = sadd.s32 1, %s2086_s20 }
  0x32   : > { %p2265_p12 = pnand %p1710_p10, %p241_p11  ;;  %s2958_s7 = smov (!%p2212_p0, %s37_s7), %s2102_s24 }
  0x33   : > { %p57_p13 = scmp.ne.s32.totalorder %s2086_s20, %s2082_s19  ;;  %p63_p3 = scmp.ne.s32.totalorder %s2082_s19, %s2078_s18 }
  0x34   : > { %p39_p9 = scmp.ge.s32.totalorder %s2958_s7, 2  ;;  %p145_p4 = scmp.eq.s32.totalorder %s2209_s26, 3 }
  0x35   : > { %p2282_p5 = por %p2882_p1, %p57_p13  ;;  %p2291_p6 = por %p2883_p2, %p63_p3 }
  0x36   : > { %s2960_s7 = smov (%p39_p9, %s2958_s7), 0  ;;  %p2297_p0 = por %p145_p4, %p57_p13 }
  0x37   : > { %2914 = sst [smem:[#allocation21_spill]] %s2960_s7  ;;  %p151_p10 = scmp.eq.s32.totalorder %s1696_s29, 3 }
  0x38   : > { %s2915_s28 = scalar_select %p2297_p0, 1, 0 }
  0x39   : > { %s46_s15 = ssub.s32 %s2102_s24, %s2960_s7  ;;  %s171_s8 = sand.u32 1, %s2086_s20  }
  0x3a   : > { %2916 = sst [smem:[#allocation22_spill]] %s2915_s28  ;;  %p48_p11 = scmp.eq.s32.totalorder %s46_s15, 0 }
  0x3b   : > { %s103_s27 = sor.u32 %s2228_s30, %s46_s15  ;;  %p2312_p2 = por %p151_p10, %p63_p3 }
  0x3c   : > { %p2305_p1 = scmp.eq.s32.totalorder %s103_s27, 0  ;;  %s1699_s5 = sshll.u32 %s171_s8, 9 }
  0x3d   : > { %s2918_s6 = scalar_select %p2312_p2, 1, 0 }
  0x3e   : > { %s2317_s1 = scalar_select %p48_p11, %s2086_s20, %s50_s10  }
  0x3f   : > { %s1722_s17 = sshll.u32 %s2102_s24, 8  ;;  %s2919_s0 = sld [smem:[#allocation23_spill]] }
  0x40   : > { %s175_s7 = scalar_lea.vmem [#allocation3], %s1699_s5  ;;  %p2327_p13 = pnand %p1748_p8, %p2282_p5 }
  0x41   : > { %s185_s16 = sshll.u32 %s175_s7, 4  ;;  %s172_s15 = scalar_lea.sflag [#allocation4], %s171_s8  ;;  %s186_s16 = int_to_ptr.vmem [resolvable:$true] %s185_s16 }
  0x42   : > { %p1900_p3 = pneg %p2327_p13  ;;  %s1911_s10 = scalar_lea.vmem %s186_s16, 8192 }
  0x43   : > { %p1912_p9 = scmp.ne.s32.totalorder %s186_s16, %s1911_s10  ;;  %s2112_s27 = smov [#allocation3]  }
  0x44   : > { %s1916_s4 = sshll.u32 %s2112_s27, 4  ;;  %s1917_s4 = int_to_ptr.vmem [resolvable:$false] %s1916_s4 }
  0x45   : > { %s184_s29 = scalar_lea.hbm %s2919_s0, %s1722_s17  ;;  %p1914_p4 = pnand %p1912_p9, %p1900_p3 }
  0x46   : > { %s1918_s17 = scalar_lea.vmem %s1917_s4, 16384  ;;  %p1919_p11 = scmp.lt.s32.totalorder %s186_s16, %s1917_s4 }
  0x47   : > { %p1915_p10 = pneg %p1914_p4  ;;  %p1920_p2 = scmp.lt.s32.totalorder %s1918_s17, %s1911_s10 }
  0x49   : > { %p1921_p0 = por %p1920_p2, %p1919_p11 }
  0x4b   : > { %p1922_p7 = pnand %p1921_p0, %p1915_p10 }
  0x4d   : > { %1925 = shalt.err (!%p1922_p7)
}
  0x4e   : > { %s2895_s5 = smov 256   ;;  %s2896_s7 = smov 16  }
  0x4f   : > { %s2921_s3 = smov 512   ;;  %s106_s28 = sadd.s32 1, %s2062_s14 }
  0x50   : > { %1737 = dma.hbm_to_vmem [thread:$0]  (!%p2327_p13), %s184_s29, 8192, %s186_s16, %s172_s15, %s2921_s3, %s2895_s5, %s2896_s7  }
  0x51   : > { %s2342_s8 = scalar_select %p2305_p1, %s2062_s14, %s106_s28  }
  0x52   : > { %p113_p2 = scmp.ne.s32.totalorder %s2062_s14, %s2058_s13  ;;  %p119_p7 = scmp.ne.s32.totalorder %s2058_s13, %s2054_s12 }
  0x53   : > { %s221_s10 = sand.u32 1, %s2062_s14   ;;  %s1707_s27 = sshll.u32 %s2102_s24, 1 }
  0x54   : > { %p2922_p5 = scmp.eq.s32.totalorder %s2106_s25, 0  ;;  %p2923_p3 = scmp.eq.s32.totalorder %s2209_s26, 0 }
  0x55   : > { %s1705_s30 = sshll.u32 %s221_s10, 10  ;;  %s1724_s17 = sshll.u32 %s2098_s23, 8 }
  0x56   : > { %p115_p0 = por %p113_p2, %p2922_p5  ;;  %p2354_p9 = por %p119_p7, %p2923_p3 }
  0x57   : > { %s230_s0 = sadd.s32 %s1724_s17, %s1707_s27  ;;  %s223_s29 = scalar_lea.vmem [#allocation8], %s1705_s30 }
  0x58   : > { %s1709_s16 = sshll.u32 %s230_s0, 7  ;;  %s233_s9 = sshll.u32 %s223_s29, 4  ;;  %s234_s9 = int_to_ptr.vmem [resolvable:$true] %s233_s9 }
  0x59   : > { %s232_s5 = scalar_lea.hbm %s2878_s2, %s1709_s16  ;;  %p2364_p1 = pnand %p1748_p8, %p115_p0 }
  0x5a   : > { %s1939_s7 = scalar_lea.vmem %s234_s9, 16384  ;;  %s2115_s0 = smov [#allocation8]  }
  0x5b   : > { %p1928_p13 = pneg %p2364_p1  ;;  %p1940_p4 = scmp.ne.s32.totalorder %s234_s9, %s1939_s7 }
  0x5c   : > { %s1944_s10 = sshll.u32 %s2115_s0, 4  ;;  %s1945_s10 = int_to_ptr.vmem [resolvable:$false] %s1944_s10 }
  0x5d   : > { %p1942_p10 = pnand %p1940_p4, %p1928_p13  ;;  %s1946_s27 = scalar_lea.vmem %s1945_s10, 32768 }
  0x5e   : > { %p1947_p2 = scmp.lt.s32.totalorder %s234_s9, %s1945_s10  ;;  %p1948_p7 = scmp.lt.s32.totalorder %s1946_s27, %s1939_s7 }
  0x5f   : > { %p1943_p11 = pneg %p1942_p10 }
  0x60   : > { %p1949_p5 = por %p1948_p7, %p1947_p2 }
  0x62   : > { %p1950_p3 = pnand %p1949_p5, %p1943_p11 }
  0x64   : > { %1953 = shalt.err (!%p1950_p3)
}
  0x65   : > { %s2926_s30 = smov 16   ;;  %s2927_s17 = smov 256  }
  0x66   : > { %1743 = dma.hbm_to_vmem [thread:$0]  (!%p2364_p1), %s232_s5, 16384, %s234_s9, %s2255_s21, %s2921_s3, %s2927_s17, %s2926_s30  }
  0x67   : > { %245 = sbr.rel (%p2265_p12) target bundleno = 622 (0x26e), region = 32  ;;  %s2379_s16 = sand.u32 (!%p2265_p12), 1, %s2082_s19  }
  0x68   : > { %s1711_s7 = sshll.u32 (!%p2265_p12), %s2379_s16, 9  ;;  %s248_s29 = scalar_lea.sflag (!%p2265_p12), [#allocation4], %s2379_s16 }
  0x69   : > { %s2383_s15 = scalar_lea.vmem (!%p2265_p12), [#allocation3], %s1711_s7 }
  0x6c   : > { %2037 = dma.done.wait (%p2291_p6), %s248_s29, 8192  }
  0x6d   : > { %2039 = vsyncadd (%p2291_p6), %s248_s29, 4294959104  ;;  %s2928_s21 = sld [smem:[#allocation14_spill]]  ;;  %s256_s11 = sand.u32 1, %s2209_s26  }
  0x6e   : > { %s2929_s5 = sld [smem:[#allocation19_spill]]  ;;  %s257_s28 = scalar_lea.sflag [#allocation7], %s256_s11 }
  0x73   : > { %s258_s3 = sand.u32 1, %s2928_s21  }
  0x74   : > { %s1712_s9 = sshll.u32 %s258_s3, 10  ;;  %p2930_p8 = scmp.ne.s32.totalorder %s2929_s5, 0 }
  0x75   : > { %s2391_s12 = scalar_lea.vmem [#allocation6], %s1712_s9 }
  0x76   : > { %2041 = dma.done.wait (%p2930_p8), %s257_s28, 16384  }
  0x77   : > { %2043 = vsyncadd (%p2930_p8), %s257_s28, 4294950912  ;;  %s267_s0 = sand.u32 1, %s2058_s13  }
  0x78   : > { %s1713_s10 = sshll.u32 %s267_s0, 10 }
  0x79   : > { %s2398_s22 = scalar_lea.vmem [#allocation8], %s1713_s10 }
  0x7a   : > { %2045 = dma.done.wait (%p2354_p9), %s257_s28, 16384  }
  0x7b   : > { %2047 = vsyncadd (%p2354_p9), %s257_s28, 4294950912  ;;  %s2404_s26 = scalar_lea.vmem [#allocation9], %s1711_s7  ;;  %s2931_s27 = sld [smem:[#allocation16_spill]] }
  0x81   : > { %p1715_p12 = scmp.ne.s32.totalorder %s2931_s27, 0 }
  0x83   : > { %313 = sbr.rel (%p1715_p12) target bundleno = 169 (0xa9), region = 48 }
  0x88   : > { %v314_v0 = vld [vmem:[%s2383_s15] sm:$0xff]  ;;  %v315_v1 = vld [vmem:[%s2383_s15 + $0x8] sm:$0xff]  ;;  %v316_v2 = vld [vmem:[%s2383_s15 + $0x10] sm:$0xff] }
  0x89   : > { %378 = vst [vmem:[#allocation2 + $0xb0] sm:$0xff] %v314_v0  ;;  %379 = vst [vmem:[#allocation2 + $0x1b0] sm:$0xff] %v315_v1  ;;  %v317_v3 = vld [vmem:[%s2383_s15 + $0x18] sm:$0xff]  ;;  %v318_v4 = vld [vmem:[%s2383_s15 + $0x20] sm:$0xff] }
  0x8a   : > { %380 = vst [vmem:[#allocation2 + $0xd8] sm:$0xff] %v316_v2  ;;  %v319_v5 = vld [vmem:[%s2383_s15 + $0x28] sm:$0xff]  ;;  %381 = vst [vmem:[#allocation2 + $0x18] sm:$0xff] %v317_v3  ;;  %v320_v6 = vld [vmem:[%s2383_s15 + $0x30] sm:$0xff] }
  0x8b   : > { %382 = vst [vmem:[#allocation2 + $0x50] sm:$0xff] %v318_v4  ;;  %383 = vst [vmem:[#allocation2 + $0x168] sm:$0xff] %v319_v5  ;;  %v321_v7 = vld [vmem:[%s2383_s15 + $0x38] sm:$0xff]  ;;  %v322_v8 = vld [vmem:[%s2383_s15 + $0x40] sm:$0xff] }
  0x8c   : > { %384 = vst [vmem:[#allocation2 + $0x130] sm:$0xff] %v320_v6  ;;  %385 = vst [vmem:[#allocation2 + $0x48] sm:$0xff] %v321_v7  ;;  %v323_v9 = vld [vmem:[%s2383_s15 + $0x48] sm:$0xff]  ;;  %v324_v10 = vld [vmem:[%s2383_s15 + $0x50] sm:$0xff] }
  0x8d   : > { %386 = vst [vmem:[#allocation2 + $0x180] sm:$0xff] %v322_v8  ;;  %v325_v11 = vld [vmem:[%s2383_s15 + $0x58] sm:$0xff]  ;;  %387 = vst [vmem:[#allocation2 + $0x110] sm:$0xff] %v323_v9  ;;  %v326_v12 = vld [vmem:[%s2383_s15 + $0x60] sm:$0xff] }
  0x8e   : > { %388 = vst [vmem:[#allocation2 + $0x118] sm:$0xff] %v324_v10  ;;  %389 = vst [vmem:[#allocation2 + $0x98] sm:$0xff] %v325_v11  ;;  %v327_v13 = vld [vmem:[%s2383_s15 + $0x68] sm:$0xff]  ;;  %v328_v14 = vld [vmem:[%s2383_s15 + $0x70] sm:$0xff] }
  0x8f   : > { %390 = vst [vmem:[#allocation2 + $0x120] sm:$0xff] %v326_v12  ;;  %391 = vst [vmem:[#allocation2 + $0x150] sm:$0xff] %v327_v13  ;;  %v329_v15 = vld [vmem:[%s2383_s15 + $0x78] sm:$0xff]  ;;  %v330_v16 = vld [vmem:[%s2383_s15 + $0x80] sm:$0xff] }
  0x90   : > { %392 = vst [vmem:[#allocation2 + $0x108] sm:$0xff] %v328_v14  ;;  %v331_v17 = vld [vmem:[%s2383_s15 + $0x88] sm:$0xff]  ;;  %393 = vst [vmem:[#allocation2 + $0x60] sm:$0xff] %v329_v15  ;;  %v332_v18 = vld [vmem:[%s2383_s15 + $0x90] sm:$0xff] }
  0x91   : > { %394 = vst [vmem:[#allocation2 + $0xe0] sm:$0xff] %v330_v16  ;;  %395 = vst [vmem:[#allocation2 + $0x188] sm:$0xff] %v331_v17  ;;  %v333_v19 = vld [vmem:[%s2383_s15 + $0x98] sm:$0xff]  ;;  %v334_v20 = vld [vmem:[%s2383_s15 + $0xa0] sm:$0xff] }
  0x92   : > { %396 = vst [vmem:[#allocation2 + $0x138] sm:$0xff] %v332_v18  ;;  %397 = vst [vmem:[#allocation2 + $0x140] sm:$0xff] %v333_v19  ;;  %v335_v21 = vld [vmem:[%s2383_s15 + $0xa8] sm:$0xff]  ;;  %v336_v22 = vld [vmem:[%s2383_s15 + $0xb0] sm:$0xff] }
  0x93   : > { %398 = vst [vmem:[#allocation2 + $0x80] sm:$0xff] %v334_v20  ;;  %v337_v23 = vld [vmem:[%s2383_s15 + $0xb8] sm:$0xff]  ;;  %399 = vst [vmem:[#allocation2 + $0x1a8] sm:$0xff] %v335_v21  ;;  %v338_v24 = vld [vmem:[%s2383_s15 + $0xc0] sm:$0xff] }
  0x94   : > { %400 = vst [vmem:[#allocation2 + $0x1b8] sm:$0xff] %v336_v22  ;;  %401 = vst [vmem:[#allocation2 + $0x28] sm:$0xff] %v337_v23  ;;  %v339_v25 = vld [vmem:[%s2383_s15 + $0xc8] sm:$0xff]  ;;  %v340_v26 = vld [vmem:[%s2383_s15 + $0xd0] sm:$0xff] }
  0x95   : > { %402 = vst [vmem:[#allocation2 + $0x1e8] sm:$0xff] %v338_v24  ;;  %403 = vst [vmem:[#allocation2 + $0xf8] sm:$0xff] %v339_v25  ;;  %v341_v27 = vld [vmem:[%s2383_s15 + $0xd8] sm:$0xff]  ;;  %v342_v28 = vld [vmem:[%s2383_s15 + $0xe0] sm:$0xff] }
  0x96   : > { %404 = vst [vmem:[#allocation2 + $0x160] sm:$0xff] %v340_v26  ;;  %v343_v29 = vld [vmem:[%s2383_s15 + $0xe8] sm:$0xff]  ;;  %405 = vst [vmem:[#allocation2 + $0x30] sm:$0xff] %v341_v27  ;;  %v344_v30 = vld [vmem:[%s2383_s15 + $0xf0] sm:$0xff] }
  0x97   : > { %406 = vst [vmem:[#allocation2 + $0x1e0] sm:$0xff] %v342_v28  ;;  %407 = vst [vmem:[#allocation2] sm:$0xff] %v343_v29  ;;  %v345_v31 = vld [vmem:[%s2383_s15 + $0xf8] sm:$0xff]  ;;  %v346_v32 = vld [vmem:[%s2383_s15 + $0x100] sm:$0xff] }
  0x98   : > { %408 = vst [vmem:[#allocation2 + $0xf0] sm:$0xff] %v344_v30  ;;  %409 = vst [vmem:[#allocation2 + $0x8] sm:$0xff] %v345_v31  ;;  %v347_v33 = vld [vmem:[%s2383_s15 + $0x108] sm:$0xff]  ;;  %v348_v34 = vld [vmem:[%s2383_s15 + $0x110] sm:$0xff] }
  0x99   : > { %410 = vst [vmem:[#allocation2 + $0x148] sm:$0xff] %v346_v32  ;;  %v349_v35 = vld [vmem:[%s2383_s15 + $0x118] sm:$0xff]  ;;  %411 = vst [vmem:[#allocation2 + $0x1d0] sm:$0xff] %v347_v33  ;;  %v350_v36 = vld [vmem:[%s2383_s15 + $0x120] sm:$0xff] }
  0x9a   : > { %412 = vst [vmem:[#allocation2 + $0x100] sm:$0xff] %v348_v34  ;;  %413 = vst [vmem:[#allocation2 + $0xc8] sm:$0xff] %v349_v35  ;;  %v351_v37 = vld [vmem:[%s2383_s15 + $0x128] sm:$0xff]  ;;  %v352_v38 = vld [vmem:[%s2383_s15 + $0x130] sm:$0xff] }
  0x9b   : > { %414 = vst [vmem:[#allocation2 + $0x40] sm:$0xff] %v350_v36  ;;  %415 = vst [vmem:[#allocation2 + $0x1f8] sm:$0xff] %v351_v37  ;;  %v353_v39 = vld [vmem:[%s2383_s15 + $0x138] sm:$0xff]  ;;  %v354_v40 = vld [vmem:[%s2383_s15 + $0x140] sm:$0xff] }
  0x9c   : > { %416 = vst [vmem:[#allocation2 + $0x20] sm:$0xff] %v352_v38  ;;  %v355_v41 = vld [vmem:[%s2383_s15 + $0x148] sm:$0xff]  ;;  %417 = vst [vmem:[#allocation2 + $0x128] sm:$0xff] %v353_v39  ;;  %v356_v42 = vld [vmem:[%s2383_s15 + $0x150] sm:$0xff] }
  0x9d   : > { %418 = vst [vmem:[#allocation2 + $0x1a0] sm:$0xff] %v354_v40  ;;  %419 = vst [vmem:[#allocation2 + $0x1f0] sm:$0xff] %v355_v41  ;;  %v357_v43 = vld [vmem:[%s2383_s15 + $0x158] sm:$0xff]  ;;  %v358_v44 = vld [vmem:[%s2383_s15 + $0x160] sm:$0xff] }
  0x9e   : > { %420 = vst [vmem:[#allocation2 + $0xe8] sm:$0xff] %v356_v42  ;;  %421 = vst [vmem:[#allocation2 + $0x78] sm:$0xff] %v357_v43  ;;  %v359_v45 = vld [vmem:[%s2383_s15 + $0x168] sm:$0xff]  ;;  %v360_v46 = vld [vmem:[%s2383_s15 + $0x170] sm:$0xff] }
  0x9f   : > { %422 = vst [vmem:[#allocation2 + $0x70] sm:$0xff] %v358_v44  ;;  %v361_v47 = vld [vmem:[%s2383_s15 + $0x178] sm:$0xff]  ;;  %423 = vst [vmem:[#allocation2 + $0x90] sm:$0xff] %v359_v45  ;;  %v362_v48 = vld [vmem:[%s2383_s15 + $0x180] sm:$0xff] }
  0xa0   : > { %424 = vst [vmem:[#allocation2 + $0x1d8] sm:$0xff] %v360_v46  ;;  %425 = vst [vmem:[#allocation2 + $0xd0] sm:$0xff] %v361_v47  ;;  %v363_v49 = vld [vmem:[%s2383_s15 + $0x188] sm:$0xff]  ;;  %v364_v50 = vld [vmem:[%s2383_s15 + $0x190] sm:$0xff] }
  0xa1   : > { %426 = vst [vmem:[#allocation2 + $0xb8] sm:$0xff] %v362_v48  ;;  %427 = vst [vmem:[#allocation2 + $0x88] sm:$0xff] %v363_v49  ;;  %v365_v51 = vld [vmem:[%s2383_s15 + $0x198] sm:$0xff]  ;;  %v366_v52 = vld [vmem:[%s2383_s15 + $0x1a0] sm:$0xff] }
  0xa2   : > { %428 = vst [vmem:[#allocation2 + $0xa8] sm:$0xff] %v364_v50  ;;  %v367_v53 = vld [vmem:[%s2383_s15 + $0x1a8] sm:$0xff]  ;;  %429 = vst [vmem:[#allocation2 + $0x1c8] sm:$0xff] %v365_v51  ;;  %v368_v54 = vld [vmem:[%s2383_s15 + $0x1b0] sm:$0xff] }
  0xa3   : > { %430 = vst [vmem:[#allocation2 + $0x170] sm:$0xff] %v366_v52  ;;  %431 = vst [vmem:[#allocation2 + $0x178] sm:$0xff] %v367_v53  ;;  %v369_v55 = vld [vmem:[%s2383_s15 + $0x1b8] sm:$0xff]  ;;  %v370_v56 = vld [vmem:[%s2383_s15 + $0x1c0] sm:$0xff] }
  0xa4   : > { %432 = vst [vmem:[#allocation2 + $0x68] sm:$0xff] %v368_v54  ;;  %433 = vst [vmem:[#allocation2 + $0x190] sm:$0xff] %v369_v55  ;;  %v371_v57 = vld [vmem:[%s2383_s15 + $0x1c8] sm:$0xff]  ;;  %v372_v58 = vld [vmem:[%s2383_s15 + $0x1d0] sm:$0xff] }
  0xa5   : > { %434 = vst [vmem:[#allocation2 + $0x198] sm:$0xff] %v370_v56  ;;  %v373_v59 = vld [vmem:[%s2383_s15 + $0x1d8] sm:$0xff]  ;;  %435 = vst [vmem:[#allocation2 + $0x38] sm:$0xff] %v371_v57  ;;  %v374_v60 = vld [vmem:[%s2383_s15 + $0x1e0] sm:$0xff] }
  0xa6   : > { %436 = vst [vmem:[#allocation2 + $0xc0] sm:$0xff] %v372_v58  ;;  %437 = vst [vmem:[#allocation2 + $0x1c0] sm:$0xff] %v373_v59  ;;  %v375_v61 = vld [vmem:[%s2383_s15 + $0x1e8] sm:$0xff]  ;;  %v376_v62 = vld [vmem:[%s2383_s15 + $0x1f0] sm:$0xff] }
  0xa7   : > { %438 = vst [vmem:[#allocation2 + $0x158] sm:$0xff] %v374_v60  ;;  %439 = vst [vmem:[#allocation2 + $0x10] sm:$0xff] %v375_v61  ;;  %v377_v63 = vld [vmem:[%s2383_s15 + $0x1f8] sm:$0xff] }
  0xa8   : > { %440 = vst [vmem:[#allocation2 + $0x58] sm:$0xff] %v376_v62  ;;  %441 = vst [vmem:[#allocation2 + $0xa0] sm:$0xff] %v377_v63 }
  0xa9 PF: > { %v665_v0 = vld [vmem:[%s2398_s22 + $0xf8] sm:$0xff]  ;;  %v664_v2 = vld [vmem:[%s2398_s22 + $0xf0] sm:$0xff]  ;;  %v663_v4 = vld [vmem:[%s2398_s22 + $0xe8] sm:$0xff]  ;;  %s2932_s4 = sld [smem:[#allocation16_spill]] }
  0xaa   : > { %v729_v1 = vld [vmem:[%s2398_s22 + $0x2f8] sm:$0xff]  ;;  %762 = vmatprep.subr.mxu0 %v665_v0  ;;  %v728_v3 = vld [vmem:[%s2398_s22 + $0x2f0] sm:$0xff]  ;;  %v727_v5 = vld [vmem:[%s2398_s22 + $0x2e8] sm:$0xff] }
  0xab   : > { %1019 = vmatprep.subr.mxu1 %v729_v1  ;;  %763 = vmatpush1.msra.mxu0 %v664_v2  ;;  %v662_v6 = vld [vmem:[%s2398_s22 + $0xe0] sm:$0xff]  ;;  %v661_v8 = vld [vmem:[%s2398_s22 + $0xd8] sm:$0xff]  ;;  %v660_v10 = vld [vmem:[%s2398_s22 + $0xd0] sm:$0xff] }
  0xac   : > { %1020 = vmatpush1.msra.mxu1 %v728_v3  ;;  %v726_v7 = vld [vmem:[%s2398_s22 + $0x2e0] sm:$0xff]  ;;  %764 = vmatprep.subr.mxu0 %v663_v4  ;;  %v725_v9 = vld [vmem:[%s2398_s22 + $0x2d8] sm:$0xff]  ;;  %v724_v11 = vld [vmem:[%s2398_s22 + $0x2d0] sm:$0xff] }
  0xad   : > { %1021 = vmatprep.subr.mxu1 %v727_v5  ;;  %765 = vmatpush1.msra.mxu0 %v662_v6  ;;  %v659_v12 = vld [vmem:[%s2398_s22 + $0xc8] sm:$0xff]  ;;  %v658_v14 = vld [vmem:[%s2398_s22 + $0xc0] sm:$0xff]  ;;  %v657_v16 = vld [vmem:[%s2398_s22 + $0xb8] sm:$0xff] }
  0xae   : > { %1022 = vmatpush1.msra.mxu1 %v726_v7  ;;  %v723_v13 = vld [vmem:[%s2398_s22 + $0x2c8] sm:$0xff]  ;;  %766 = vmatprep.subr.mxu0 %v661_v8  ;;  %v722_v15 = vld [vmem:[%s2398_s22 + $0x2c0] sm:$0xff]  ;;  %v721_v17 = vld [vmem:[%s2398_s22 + $0x2b8] sm:$0xff] }
  0xaf   : > { %1023 = vmatprep.subr.mxu1 %v725_v9  ;;  %767 = vmatpush1.msra.mxu0 %v660_v10  ;;  %v656_v18 = vld [vmem:[%s2398_s22 + $0xb0] sm:$0xff]  ;;  %v655_v20 = vld [vmem:[%s2398_s22 + $0xa8] sm:$0xff]  ;;  %v654_v22 = vld [vmem:[%s2398_s22 + $0xa0] sm:$0xff]  ;;  %p1716_p6 = scmp.ne.s32.totalorder %s2932_s4, 1 }
  0xb0   : > { %1024 = vmatpush1.msra.mxu1 %v724_v11  ;;  %768 = vmatprep.subr.mxu0 %v659_v12  ;;  %v720_v19 = vld [vmem:[%s2398_s22 + $0x2b0] sm:$0xff]  ;;  %v719_v21 = vld [vmem:[%s2398_s22 + $0x2a8] sm:$0xff]  ;;  %v718_v23 = vld [vmem:[%s2398_s22 + $0x2a0] sm:$0xff] }
  0xb1   : > { %1025 = vmatprep.subr.mxu1 %v723_v13  ;;  %769 = vmatpush1.msra.mxu0 %v658_v14  ;;  %v653_v24 = vld [vmem:[%s2398_s22 + $0x98] sm:$0xff]  ;;  %v652_v26 = vld [vmem:[%s2398_s22 + $0x90] sm:$0xff]  ;;  %v651_v28 = vld [vmem:[%s2398_s22 + $0x88] sm:$0xff] }
  0xb2   : > { %1026 = vmatpush1.msra.mxu1 %v722_v15  ;;  %770 = vmatprep.subr.mxu0 %v657_v16  ;;  %v717_v25 = vld [vmem:[%s2398_s22 + $0x298] sm:$0xff]  ;;  %v716_v27 = vld [vmem:[%s2398_s22 + $0x290] sm:$0xff]  ;;  %v715_v29 = vld [vmem:[%s2398_s22 + $0x288] sm:$0xff] }
  0xb3   : > { %1027 = vmatprep.subr.mxu1 %v721_v17  ;;  %771 = vmatpush1.msra.mxu0 %v656_v18  ;;  %v650_v30 = vld [vmem:[%s2398_s22 + $0x80] sm:$0xff]  ;;  %v649_v32 = vld [vmem:[%s2398_s22 + $0x78] sm:$0xff]  ;;  %v648_v34 = vld [vmem:[%s2398_s22 + $0x70] sm:$0xff] }
  0xb4   : > { %1028 = vmatpush1.msra.mxu1 %v720_v19  ;;  %772 = vmatprep.subr.mxu0 %v655_v20  ;;  %v714_v31 = vld [vmem:[%s2398_s22 + $0x280] sm:$0xff]  ;;  %v713_v33 = vld [vmem:[%s2398_s22 + $0x278] sm:$0xff]  ;;  %v712_v35 = vld [vmem:[%s2398_s22 + $0x270] sm:$0xff] }
  0xb5   : > { %1029 = vmatprep.subr.mxu1 %v719_v21  ;;  %773 = vmatpush1.msra.mxu0 %v654_v22  ;;  %v647_v36 = vld [vmem:[%s2398_s22 + $0x68] sm:$0xff]  ;;  %v646_v38 = vld [vmem:[%s2398_s22 + $0x60] sm:$0xff]  ;;  %v645_v40 = vld [vmem:[%s2398_s22 + $0x58] sm:$0xff] }
  0xb6   : > { %1030 = vmatpush1.msra.mxu1 %v718_v23  ;;  %774 = vmatprep.subr.mxu0 %v653_v24  ;;  %v711_v37 = vld [vmem:[%s2398_s22 + $0x268] sm:$0xff]  ;;  %v710_v39 = vld [vmem:[%s2398_s22 + $0x260] sm:$0xff]  ;;  %v709_v41 = vld [vmem:[%s2398_s22 + $0x258] sm:$0xff] }
  0xb7   : > { %1031 = vmatprep.subr.mxu1 %v717_v25  ;;  %775 = vmatpush1.msra.mxu0 %v652_v26  ;;  %v644_v42 = vld [vmem:[%s2398_s22 + $0x50] sm:$0xff]  ;;  %v643_v44 = vld [vmem:[%s2398_s22 + $0x48] sm:$0xff]  ;;  %v642_v46 = vld [vmem:[%s2398_s22 + $0x40] sm:$0xff] }
  0xb8   : > { %1032 = vmatpush1.msra.mxu1 %v716_v27  ;;  %776 = vmatprep.subr.mxu0 %v651_v28  ;;  %v708_v43 = vld [vmem:[%s2398_s22 + $0x250] sm:$0xff]  ;;  %v707_v45 = vld [vmem:[%s2398_s22 + $0x248] sm:$0xff]  ;;  %v706_v47 = vld [vmem:[%s2398_s22 + $0x240] sm:$0xff] }
  0xb9   : > { %1033 = vmatprep.subr.mxu1 %v715_v29  ;;  %777 = vmatpush1.msra.mxu0 %v650_v30  ;;  %v641_v48 = vld [vmem:[%s2398_s22 + $0x38] sm:$0xff]  ;;  %v640_v50 = vld [vmem:[%s2398_s22 + $0x30] sm:$0xff]  ;;  %v639_v52 = vld [vmem:[%s2398_s22 + $0x28] sm:$0xff] }
  0xba   : > { %1034 = vmatpush1.msra.mxu1 %v714_v31  ;;  %778 = vmatprep.subr.mxu0 %v649_v32  ;;  %v705_v49 = vld [vmem:[%s2398_s22 + $0x238] sm:$0xff]  ;;  %v704_v51 = vld [vmem:[%s2398_s22 + $0x230] sm:$0xff]  ;;  %v703_v53 = vld [vmem:[%s2398_s22 + $0x228] sm:$0xff] }
  0xbb   : > { %1035 = vmatprep.subr.mxu1 %v713_v33  ;;  %779 = vmatpush1.msra.mxu0 %v648_v34  ;;  %v638_v54 = vld [vmem:[%s2398_s22 + $0x20] sm:$0xff]  ;;  %v637_v56 = vld [vmem:[%s2398_s22 + $0x18] sm:$0xff]  ;;  %v636_v58 = vld [vmem:[%s2398_s22 + $0x10] sm:$0xff] }
  0xbc   : > { %1036 = vmatpush1.msra.mxu1 %v712_v35  ;;  %780 = vmatprep.subr.mxu0 %v647_v36  ;;  %v702_v55 = vld [vmem:[%s2398_s22 + $0x220] sm:$0xff]  ;;  %v701_v57 = vld [vmem:[%s2398_s22 + $0x218] sm:$0xff]  ;;  %v700_v59 = vld [vmem:[%s2398_s22 + $0x210] sm:$0xff] }
  0xbd   : > { %1037 = vmatprep.subr.mxu1 %v711_v37  ;;  %781 = vmatpush1.msra.mxu0 %v646_v38  ;;  %v635_v60 = vld [vmem:[%s2398_s22 + $0x8] sm:$0xff]  ;;  %v634_v62 = vld [vmem:[%s2398_s22] sm:$0xff]  ;;  %v697_v0 = vld [vmem:[%s2398_s22 + $0x1f8] sm:$0xff] }
  0xbe   : > { %1038 = vmatpush1.msra.mxu1 %v710_v39  ;;  %782 = vmatprep.subr.mxu0 %v645_v40  ;;  %v699_v61 = vld [vmem:[%s2398_s22 + $0x208] sm:$0xff]  ;;  %v698_v63 = vld [vmem:[%s2398_s22 + $0x200] sm:$0xff]  ;;  %v761_v1 = vld [vmem:[%s2398_s22 + $0x3f8] sm:$0xff] }
  0xbf   : > { %1039 = vmatprep.subr.mxu1 %v709_v41  ;;  %783 = vmatpush1.msra.mxu0 %v644_v42  ;;  %v696_v2 = vld [vmem:[%s2398_s22 + $0x1f0] sm:$0xff]  ;;  %v695_v4 = vld [vmem:[%s2398_s22 + $0x1e8] sm:$0xff]  ;;  %v694_v6 = vld [vmem:[%s2398_s22 + $0x1e0] sm:$0xff] }
  0xc0   : > { %1040 = vmatpush1.msra.mxu1 %v708_v43  ;;  %784 = vmatprep.subr.mxu0 %v643_v44  ;;  %v760_v3 = vld [vmem:[%s2398_s22 + $0x3f0] sm:$0xff]  ;;  %v759_v5 = vld [vmem:[%s2398_s22 + $0x3e8] sm:$0xff]  ;;  %v758_v7 = vld [vmem:[%s2398_s22 + $0x3e0] sm:$0xff] }
  0xc1   : > { %1041 = vmatprep.subr.mxu1 %v707_v45  ;;  %785 = vmatpush1.msra.mxu0 %v642_v46  ;;  %v693_v8 = vld [vmem:[%s2398_s22 + $0x1d8] sm:$0xff]  ;;  %v692_v10 = vld [vmem:[%s2398_s22 + $0x1d0] sm:$0xff]  ;;  %v691_v12 = vld [vmem:[%s2398_s22 + $0x1c8] sm:$0xff] }
  0xc2   : > { %1042 = vmatpush1.msra.mxu1 %v706_v47  ;;  %786 = vmatprep.subr.mxu0 %v641_v48  ;;  %v757_v9 = vld [vmem:[%s2398_s22 + $0x3d8] sm:$0xff]  ;;  %v756_v11 = vld [vmem:[%s2398_s22 + $0x3d0] sm:$0xff]  ;;  %v755_v13 = vld [vmem:[%s2398_s22 + $0x3c8] sm:$0xff] }
  0xc3   : > { %1043 = vmatprep.subr.mxu1 %v705_v49  ;;  %787 = vmatpush1.msra.mxu0 %v640_v50  ;;  %v690_v14 = vld [vmem:[%s2398_s22 + $0x1c0] sm:$0xff]  ;;  %v689_v16 = vld [vmem:[%s2398_s22 + $0x1b8] sm:$0xff]  ;;  %v688_v18 = vld [vmem:[%s2398_s22 + $0x1b0] sm:$0xff] }
  0xc4   : > { %1044 = vmatpush1.msra.mxu1 %v704_v51  ;;  %788 = vmatprep.subr.mxu0 %v639_v52  ;;  %v754_v15 = vld [vmem:[%s2398_s22 + $0x3c0] sm:$0xff]  ;;  %v753_v17 = vld [vmem:[%s2398_s22 + $0x3b8] sm:$0xff]  ;;  %v752_v19 = vld [vmem:[%s2398_s22 + $0x3b0] sm:$0xff] }
  0xc5   : > { %1045 = vmatprep.subr.mxu1 %v703_v53  ;;  %789 = vmatpush1.msra.mxu0 %v638_v54  ;;  %v687_v20 = vld [vmem:[%s2398_s22 + $0x1a8] sm:$0xff]  ;;  %v686_v22 = vld [vmem:[%s2398_s22 + $0x1a0] sm:$0xff]  ;;  %v685_v24 = vld [vmem:[%s2398_s22 + $0x198] sm:$0xff] }
  0xc6   : > { %1046 = vmatpush1.msra.mxu1 %v702_v55  ;;  %790 = vmatprep.subr.mxu0 %v637_v56  ;;  %v751_v21 = vld [vmem:[%s2398_s22 + $0x3a8] sm:$0xff]  ;;  %v750_v23 = vld [vmem:[%s2398_s22 + $0x3a0] sm:$0xff]  ;;  %v749_v25 = vld [vmem:[%s2398_s22 + $0x398] sm:$0xff] }
  0xc7   : > { %1047 = vmatprep.subr.mxu1 %v701_v57  ;;  %791 = vmatpush1.msra.mxu0 %v636_v58  ;;  %v684_v26 = vld [vmem:[%s2398_s22 + $0x190] sm:$0xff]  ;;  %v683_v28 = vld [vmem:[%s2398_s22 + $0x188] sm:$0xff]  ;;  %v682_v30 = vld [vmem:[%s2398_s22 + $0x180] sm:$0xff] }
  0xc8   : > { %1048 = vmatpush1.msra.mxu1 %v700_v59  ;;  %792 = vmatprep.subr.mxu0 %v635_v60  ;;  %v748_v27 = vld [vmem:[%s2398_s22 + $0x390] sm:$0xff]  ;;  %v747_v29 = vld [vmem:[%s2398_s22 + $0x388] sm:$0xff]  ;;  %v746_v31 = vld [vmem:[%s2398_s22 + $0x380] sm:$0xff] }
  0xc9   : > { %1049 = vmatprep.subr.mxu1 %v699_v61  ;;  %793 = vmatpush1.msra.mxu0 %v634_v62  ;;  %v681_v32 = vld [vmem:[%s2398_s22 + $0x178] sm:$0xff]  ;;  %v680_v34 = vld [vmem:[%s2398_s22 + $0x170] sm:$0xff]  ;;  %v679_v36 = vld [vmem:[%s2398_s22 + $0x168] sm:$0xff] }
  0xca   : > { %1050 = vmatpush1.msra.mxu1 %v698_v63  ;;  %794 = vmatprep.subr.mxu0 %v697_v0  ;;  %v745_v33 = vld [vmem:[%s2398_s22 + $0x378] sm:$0xff]  ;;  %v744_v35 = vld [vmem:[%s2398_s22 + $0x370] sm:$0xff]  ;;  %v743_v37 = vld [vmem:[%s2398_s22 + $0x368] sm:$0xff] }
  0xcb   : > { %1051 = vmatprep.subr.mxu1 %v761_v1  ;;  %795 = vmatpush2.msra.mxu0 %v696_v2  ;;  %v678_v38 = vld [vmem:[%s2398_s22 + $0x160] sm:$0xff]  ;;  %v677_v40 = vld [vmem:[%s2398_s22 + $0x158] sm:$0xff]  ;;  %v676_v42 = vld [vmem:[%s2398_s22 + $0x150] sm:$0xff] }
  0xcc   : > { %1052 = vmatpush2.msra.mxu1 %v760_v3  ;;  %796 = vmatprep.subr.mxu0 %v695_v4  ;;  %v742_v39 = vld [vmem:[%s2398_s22 + $0x360] sm:$0xff]  ;;  %v741_v41 = vld [vmem:[%s2398_s22 + $0x358] sm:$0xff]  ;;  %v740_v43 = vld [vmem:[%s2398_s22 + $0x350] sm:$0xff] }
  0xcd   : > { %1053 = vmatprep.subr.mxu1 %v759_v5  ;;  %797 = vmatpush2.msra.mxu0 %v694_v6  ;;  %v675_v44 = vld [vmem:[%s2398_s22 + $0x148] sm:$0xff]  ;;  %v674_v46 = vld [vmem:[%s2398_s22 + $0x140] sm:$0xff]  ;;  %v673_v48 = vld [vmem:[%s2398_s22 + $0x138] sm:$0xff] }
  0xce   : > { %1054 = vmatpush2.msra.mxu1 %v758_v7  ;;  %798 = vmatprep.subr.mxu0 %v693_v8  ;;  %v739_v45 = vld [vmem:[%s2398_s22 + $0x348] sm:$0xff]  ;;  %v738_v47 = vld [vmem:[%s2398_s22 + $0x340] sm:$0xff]  ;;  %v737_v49 = vld [vmem:[%s2398_s22 + $0x338] sm:$0xff] }
  0xcf   : > { %1055 = vmatprep.subr.mxu1 %v757_v9  ;;  %799 = vmatpush2.msra.mxu0 %v692_v10  ;;  %v672_v50 = vld [vmem:[%s2398_s22 + $0x130] sm:$0xff]  ;;  %v671_v52 = vld [vmem:[%s2398_s22 + $0x128] sm:$0xff]  ;;  %v670_v54 = vld [vmem:[%s2398_s22 + $0x120] sm:$0xff] }
  0xd0   : > { %1056 = vmatpush2.msra.mxu1 %v756_v11  ;;  %800 = vmatprep.subr.mxu0 %v691_v12  ;;  %v736_v51 = vld [vmem:[%s2398_s22 + $0x330] sm:$0xff]  ;;  %v735_v53 = vld [vmem:[%s2398_s22 + $0x328] sm:$0xff]  ;;  %v734_v55 = vld [vmem:[%s2398_s22 + $0x320] sm:$0xff] }
  0xd1   : > { %1057 = vmatprep.subr.mxu1 %v755_v13  ;;  %801 = vmatpush2.msra.mxu0 %v690_v14  ;;  %v669_v56 = vld [vmem:[%s2398_s22 + $0x118] sm:$0xff]  ;;  %v668_v58 = vld [vmem:[%s2398_s22 + $0x110] sm:$0xff]  ;;  %v667_v60 = vld [vmem:[%s2398_s22 + $0x108] sm:$0xff] }
  0xd2   : > { %1058 = vmatpush2.msra.mxu1 %v754_v15  ;;  %802 = vmatprep.subr.mxu0 %v689_v16  ;;  %v733_v57 = vld [vmem:[%s2398_s22 + $0x318] sm:$0xff]  ;;  %v732_v59 = vld [vmem:[%s2398_s22 + $0x310] sm:$0xff]  ;;  %v731_v61 = vld [vmem:[%s2398_s22 + $0x308] sm:$0xff] }
  0xd3   : > { %1059 = vmatprep.subr.mxu1 %v753_v17  ;;  %803 = vmatpush2.msra.mxu0 %v688_v18  ;;  %v666_v62 = vld [vmem:[%s2398_s22 + $0x100] sm:$0xff]  ;;  %v507_v63 = vld [vmem:[%s2391_s12 + $0x8] sm:$0xff]  ;;  %v509_v1 = vld [vmem:[%s2391_s12 + $0x18] sm:$0xff] }
  0xd4   : > { %1060 = vmatpush2.msra.mxu1 %v752_v19  ;;  %804 = vmatprep.subr.mxu0 %v687_v20  ;;  %v730_v0 = vld [vmem:[%s2398_s22 + $0x300] sm:$0xff]  ;;  %v508_v3 = vld [vmem:[%s2391_s12 + $0x10] sm:$0xff]  ;;  %v511_v4 = vld [vmem:[%s2391_s12 + $0x28] sm:$0xff] }
  0xd5   : > { %1061 = vmatprep.subr.mxu1 %v751_v21  ;;  %805 = vmatpush2.msra.mxu0 %v686_v22  ;;  %v506_v2 = vld [vmem:[%s2391_s12] sm:$0xff]  ;;  %v513_v5 = vld [vmem:[%s2391_s12 + $0x38] sm:$0xff]  ;;  %v512_v7 = vld [vmem:[%s2391_s12 + $0x30] sm:$0xff] }
  0xd6   : > { %1062 = vmatpush2.msra.mxu1 %v750_v23  ;;  %806 = vmatprep.subr.mxu0 %v685_v24  ;;  %v510_v6 = vld [vmem:[%s2391_s12 + $0x20] sm:$0xff]  ;;  %v515_v8 = vld [vmem:[%s2391_s12 + $0x48] sm:$0xff]  ;;  %v517_v9 = vld [vmem:[%s2391_s12 + $0x58] sm:$0xff] }
  0xd7   : > { %1063 = vmatprep.subr.mxu1 %v749_v25  ;;  %807 = vmatpush2.msra.mxu0 %v684_v26  ;;  %v514_v10 = vld [vmem:[%s2391_s12 + $0x40] sm:$0xff]  ;;  %v516_v11 = vld [vmem:[%s2391_s12 + $0x50] sm:$0xff]  ;;  %v519_v12 = vld [vmem:[%s2391_s12 + $0x68] sm:$0xff] }
  0xd8   : > { %1064 = vmatpush2.msra.mxu1 %v748_v27  ;;  %808 = vmatprep.subr.mxu0 %v683_v28  ;;  %v521_v13 = vld [vmem:[%s2391_s12 + $0x78] sm:$0xff]  ;;  %v518_v14 = vld [vmem:[%s2391_s12 + $0x60] sm:$0xff]  ;;  %v520_v15 = vld [vmem:[%s2391_s12 + $0x70] sm:$0xff] }
  0xd9   : > { %1065 = vmatprep.subr.mxu1 %v747_v29  ;;  %809 = vmatpush2.msra.mxu0 %v682_v30  ;;  %v523_v16 = vld [vmem:[%s2391_s12 + $0x88] sm:$0xff]  ;;  %v525_v17 = vld [vmem:[%s2391_s12 + $0x98] sm:$0xff]  ;;  %v522_v18 = vld [vmem:[%s2391_s12 + $0x80] sm:$0xff] }
  0xda   : > { %1066 = vmatpush2.msra.mxu1 %v746_v31  ;;  %810 = vmatprep.subr.mxu0 %v681_v32  ;;  %v524_v19 = vld [vmem:[%s2391_s12 + $0x90] sm:$0xff]  ;;  %v527_v20 = vld [vmem:[%s2391_s12 + $0xa8] sm:$0xff]  ;;  %v529_v21 = vld [vmem:[%s2391_s12 + $0xb8] sm:$0xff] }
  0xdb   : > { %1067 = vmatprep.subr.mxu1 %v745_v33  ;;  %811 = vmatpush2.msra.mxu0 %v680_v34  ;;  %v526_v22 = vld [vmem:[%s2391_s12 + $0xa0] sm:$0xff]  ;;  %v528_v23 = vld [vmem:[%s2391_s12 + $0xb0] sm:$0xff]  ;;  %v531_v24 = vld [vmem:[%s2391_s12 + $0xc8] sm:$0xff] }
  0xdc   : > { %1068 = vmatpush2.msra.mxu1 %v744_v35  ;;  %812 = vmatprep.subr.mxu0 %v679_v36  ;;  %v533_v25 = vld [vmem:[%s2391_s12 + $0xd8] sm:$0xff]  ;;  %v530_v26 = vld [vmem:[%s2391_s12 + $0xc0] sm:$0xff]  ;;  %v532_v27 = vld [vmem:[%s2391_s12 + $0xd0] sm:$0xff] }
  0xdd   : > { %1069 = vmatprep.subr.mxu1 %v743_v37  ;;  %813 = vmatpush2.msra.mxu0 %v678_v38  ;;  %v535_v28 = vld [vmem:[%s2391_s12 + $0xe8] sm:$0xff]  ;;  %v537_v29 = vld [vmem:[%s2391_s12 + $0xf8] sm:$0xff]  ;;  %v534_v30 = vld [vmem:[%s2391_s12 + $0xe0] sm:$0xff] }
  0xde   : > { %1070 = vmatpush2.msra.mxu1 %v742_v39  ;;  %814 = vmatprep.subr.mxu0 %v677_v40  ;;  %v536_v31 = vld [vmem:[%s2391_s12 + $0xf0] sm:$0xff]  ;;  %v539_v32 = vld [vmem:[%s2391_s12 + $0x108] sm:$0xff]  ;;  %v541_v33 = vld [vmem:[%s2391_s12 + $0x118] sm:$0xff] }
  0xdf   : > { %1071 = vmatprep.subr.mxu1 %v741_v41  ;;  %815 = vmatpush2.msra.mxu0 %v676_v42  ;;  %v538_v34 = vld [vmem:[%s2391_s12 + $0x100] sm:$0xff]  ;;  %v540_v35 = vld [vmem:[%s2391_s12 + $0x110] sm:$0xff]  ;;  %v543_v36 = vld [vmem:[%s2391_s12 + $0x128] sm:$0xff] }
  0xe0   : > { %1072 = vmatpush2.msra.mxu1 %v740_v43  ;;  %816 = vmatprep.subr.mxu0 %v675_v44  ;;  %v545_v37 = vld [vmem:[%s2391_s12 + $0x138] sm:$0xff]  ;;  %v542_v38 = vld [vmem:[%s2391_s12 + $0x120] sm:$0xff]  ;;  %v544_v39 = vld [vmem:[%s2391_s12 + $0x130] sm:$0xff] }
  0xe1   : > { %1073 = vmatprep.subr.mxu1 %v739_v45  ;;  %817 = vmatpush2.msra.mxu0 %v674_v46  ;;  %v547_v40 = vld [vmem:[%s2391_s12 + $0x148] sm:$0xff]  ;;  %v549_v41 = vld [vmem:[%s2391_s12 + $0x158] sm:$0xff]  ;;  %v546_v42 = vld [vmem:[%s2391_s12 + $0x140] sm:$0xff] }
  0xe2   : > { %1074 = vmatpush2.msra.mxu1 %v738_v47  ;;  %818 = vmatprep.subr.mxu0 %v673_v48  ;;  %v548_v43 = vld [vmem:[%s2391_s12 + $0x150] sm:$0xff]  ;;  %v551_v44 = vld [vmem:[%s2391_s12 + $0x168] sm:$0xff]  ;;  %v553_v45 = vld [vmem:[%s2391_s12 + $0x178] sm:$0xff] }
  0xe3   : > { %1075 = vmatprep.subr.mxu1 %v737_v49  ;;  %819 = vmatpush2.msra.mxu0 %v672_v50  ;;  %v550_v46 = vld [vmem:[%s2391_s12 + $0x160] sm:$0xff]  ;;  %v552_v47 = vld [vmem:[%s2391_s12 + $0x170] sm:$0xff]  ;;  %v555_v48 = vld [vmem:[%s2391_s12 + $0x188] sm:$0xff] }
  0xe4   : > { %1076 = vmatpush2.msra.mxu1 %v736_v51  ;;  %820 = vmatprep.subr.mxu0 %v671_v52  ;;  %v557_v49 = vld [vmem:[%s2391_s12 + $0x198] sm:$0xff]  ;;  %v554_v50 = vld [vmem:[%s2391_s12 + $0x180] sm:$0xff]  ;;  %v556_v51 = vld [vmem:[%s2391_s12 + $0x190] sm:$0xff] }
  0xe5   : > { %1077 = vmatprep.subr.mxu1 %v735_v53  ;;  %821 = vmatpush2.msra.mxu0 %v670_v54  ;;  %v559_v52 = vld [vmem:[%s2391_s12 + $0x1a8] sm:$0xff]  ;;  %v561_v53 = vld [vmem:[%s2391_s12 + $0x1b8] sm:$0xff]  ;;  %v558_v54 = vld [vmem:[%s2391_s12 + $0x1a0] sm:$0xff] }
  0xe6   : > { %1078 = vmatpush2.msra.mxu1 %v734_v55  ;;  %822 = vmatprep.subr.mxu0 %v669_v56  ;;  %v560_v55 = vld [vmem:[%s2391_s12 + $0x1b0] sm:$0xff]  ;;  %v563_v56 = vld [vmem:[%s2391_s12 + $0x1c8] sm:$0xff] }
  0xe7   : > { %1079 = vmatprep.subr.mxu1 %v733_v57  ;;  %823 = vmatpush2.msra.mxu0 %v668_v58  ;;  %v565_v57 = vld [vmem:[%s2391_s12 + $0x1d8] sm:$0xff]  ;;  %v562_v58 = vld [vmem:[%s2391_s12 + $0x1c0] sm:$0xff] }
  0xe8   : > { %1080 = vmatpush2.msra.mxu1 %v732_v59  ;;  %824 = vmatprep.subr.mxu0 %v667_v60  ;;  %v564_v59 = vld [vmem:[%s2391_s12 + $0x1d0] sm:$0xff]  ;;  %v567_v60 = vld [vmem:[%s2391_s12 + $0x1e8] sm:$0xff] }
  0xe9   : > { %1081 = vmatprep.subr.mxu1 %v731_v61  ;;  %825 = vmatpush2.msra.mxu0 %v666_v62  ;;  %v569_v61 = vld [vmem:[%s2391_s12 + $0x1f8] sm:$0xff]  ;;  %v566_v62 = vld [vmem:[%s2391_s12 + $0x1e0] sm:$0xff] }
  0xea   : > { %826 = vmatprep.mubr.f32.mxu0 %v507_v63  ;;  %1082 = vmatpush2.msra.mxu1 %v730_v0  ;;  %v568_v63 = vld [vmem:[%s2391_s12 + $0x1f0] sm:$0xff]  ;;  %v571_v0 = vld [vmem:[%s2391_s12 + $0x208] sm:$0xff] }
  0xeb   : > { %1083 = vmatprep.mubr.f32.mxu1 %v509_v1  ;;  %827 = vmatmul.mubr.f32.vlgmr.msra.gmra.mxu0 %v506_v2  ;;  %v573_v1 = vld [vmem:[%s2391_s12 + $0x218] sm:$0xff]  ;;  %v570_v2 = vld [vmem:[%s2391_s12 + $0x200] sm:$0xff] }
  0xec   : > { %1084 = vmatmul.mubr.f32.vlgmr.msra.gmra.mxu1 %v508_v3  ;;  %832 = vmatprep.mubr.f32.mxu0 %v511_v4  ;;  %v572_v3 = vld [vmem:[%s2391_s12 + $0x210] sm:$0xff]  ;;  %v575_v4 = vld [vmem:[%s2391_s12 + $0x228] sm:$0xff] }
  0xed   : > { %1089 = vmatprep.mubr.f32.mxu1 %v513_v5  ;;  %v577_v5 = vld [vmem:[%s2391_s12 + $0x238] sm:$0xff] }
  0xef   : > { %833 = vmatmul.mubr.f32.gmra.mxu0 %v510_v6  ;;  %v574_v6 = vld [vmem:[%s2391_s12 + $0x220] sm:$0xff] }
  0xf0   : > { %1090 = vmatmul.mubr.f32.gmra.mxu1 %v512_v7  ;;  %838 = vmatprep.mubr.f32.mxu0 %v515_v8  ;;  %v576_v7 = vld [vmem:[%s2391_s12 + $0x230] sm:$0xff]  ;;  %v579_v8 = vld [vmem:[%s2391_s12 + $0x248] sm:$0xff] }
  0xf1   : > { %1095 = vmatprep.mubr.f32.mxu1 %v517_v9  ;;  %v581_v9 = vld [vmem:[%s2391_s12 + $0x258] sm:$0xff] }
  0xf3   : > { %839 = vmatmul.mubr.f32.gmra.mxu0 %v514_v10  ;;  %v578_v10 = vld [vmem:[%s2391_s12 + $0x240] sm:$0xff] }
  0xf4   : > { %1096 = vmatmul.mubr.f32.gmra.mxu1 %v516_v11  ;;  %844 = vmatprep.mubr.f32.mxu0 %v519_v12  ;;  %v580_v11 = vld [vmem:[%s2391_s12 + $0x250] sm:$0xff]  ;;  %v583_v12 = vld [vmem:[%s2391_s12 + $0x268] sm:$0xff] }
  0xf5   : > { %1101 = vmatprep.mubr.f32.mxu1 %v521_v13  ;;  %v585_v13 = vld [vmem:[%s2391_s12 + $0x278] sm:$0xff] }
  0xf7   : > { %845 = vmatmul.mubr.f32.gmra.mxu0 %v518_v14  ;;  %v582_v14 = vld [vmem:[%s2391_s12 + $0x260] sm:$0xff] }
  0xf8   : > { %1102 = vmatmul.mubr.f32.gmra.mxu1 %v520_v15  ;;  %850 = vmatprep.mubr.f32.mxu0 %v523_v16  ;;  %v584_v15 = vld [vmem:[%s2391_s12 + $0x270] sm:$0xff]  ;;  %v587_v16 = vld [vmem:[%s2391_s12 + $0x288] sm:$0xff] }
  0xf9   : > { %1107 = vmatprep.mubr.f32.mxu1 %v525_v17  ;;  %v589_v17 = vld [vmem:[%s2391_s12 + $0x298] sm:$0xff] }
  0xfb   : > { %851 = vmatmul.mubr.f32.gmra.mxu0 %v522_v18  ;;  %v586_v18 = vld [vmem:[%s2391_s12 + $0x280] sm:$0xff] }
  0xfc   : > { %1108 = vmatmul.mubr.f32.gmra.mxu1 %v524_v19  ;;  %856 = vmatprep.mubr.f32.mxu0 %v527_v20  ;;  %v588_v19 = vld [vmem:[%s2391_s12 + $0x290] sm:$0xff]  ;;  %v591_v20 = vld [vmem:[%s2391_s12 + $0x2a8] sm:$0xff] }
  0xfd   : > { %1113 = vmatprep.mubr.f32.mxu1 %v529_v21  ;;  %v593_v21 = vld [vmem:[%s2391_s12 + $0x2b8] sm:$0xff] }
  0xff   : > { %857 = vmatmul.mubr.f32.gmra.mxu0 %v526_v22  ;;  %v590_v22 = vld [vmem:[%s2391_s12 + $0x2a0] sm:$0xff] }
 0x100   : > { %1114 = vmatmul.mubr.f32.gmra.mxu1 %v528_v23  ;;  %862 = vmatprep.mubr.f32.mxu0 %v531_v24  ;;  %v592_v23 = vld [vmem:[%s2391_s12 + $0x2b0] sm:$0xff]  ;;  %v595_v24 = vld [vmem:[%s2391_s12 + $0x2c8] sm:$0xff] }
 0x101   : > { %1119 = vmatprep.mubr.f32.mxu1 %v533_v25  ;;  %v597_v25 = vld [vmem:[%s2391_s12 + $0x2d8] sm:$0xff] }
 0x103   : > { %863 = vmatmul.mubr.f32.gmra.mxu0 %v530_v26  ;;  %v594_v26 = vld [vmem:[%s2391_s12 + $0x2c0] sm:$0xff] }
 0x104   : > { %1120 = vmatmul.mubr.f32.gmra.mxu1 %v532_v27  ;;  %868 = vmatprep.mubr.f32.mxu0 %v535_v28  ;;  %v596_v27 = vld [vmem:[%s2391_s12 + $0x2d0] sm:$0xff]  ;;  %v599_v28 = vld [vmem:[%s2391_s12 + $0x2e8] sm:$0xff] }
 0x105   : > { %1125 = vmatprep.mubr.f32.mxu1 %v537_v29  ;;  %v601_v29 = vld [vmem:[%s2391_s12 + $0x2f8] sm:$0xff] }
 0x107   : > { %869 = vmatmul.mubr.f32.gmra.mxu0 %v534_v30  ;;  %v598_v30 = vld [vmem:[%s2391_s12 + $0x2e0] sm:$0xff] }
 0x108   : > { %1126 = vmatmul.mubr.f32.gmra.mxu1 %v536_v31  ;;  %874 = vmatprep.mubr.f32.mxu0 %v539_v32  ;;  %v600_v31 = vld [vmem:[%s2391_s12 + $0x2f0] sm:$0xff]  ;;  %v603_v32 = vld [vmem:[%s2391_s12 + $0x308] sm:$0xff] }
 0x109   : > { %1131 = vmatprep.mubr.f32.mxu1 %v541_v33  ;;  %v605_v33 = vld [vmem:[%s2391_s12 + $0x318] sm:$0xff] }
 0x10b   : > { %875 = vmatmul.mubr.f32.gmra.mxu0 %v538_v34  ;;  %v602_v34 = vld [vmem:[%s2391_s12 + $0x300] sm:$0xff] }
 0x10c   : > { %1132 = vmatmul.mubr.f32.gmra.mxu1 %v540_v35  ;;  %880 = vmatprep.mubr.f32.mxu0 %v543_v36  ;;  %v604_v35 = vld [vmem:[%s2391_s12 + $0x310] sm:$0xff]  ;;  %v607_v36 = vld [vmem:[%s2391_s12 + $0x328] sm:$0xff] }
 0x10d   : > { %1137 = vmatprep.mubr.f32.mxu1 %v545_v37  ;;  %v609_v37 = vld [vmem:[%s2391_s12 + $0x338] sm:$0xff] }
 0x10f   : > { %881 = vmatmul.mubr.f32.gmra.mxu0 %v542_v38  ;;  %v606_v38 = vld [vmem:[%s2391_s12 + $0x320] sm:$0xff] }
 0x110   : > { %1138 = vmatmul.mubr.f32.gmra.mxu1 %v544_v39  ;;  %886 = vmatprep.mubr.f32.mxu0 %v547_v40  ;;  %v608_v39 = vld [vmem:[%s2391_s12 + $0x330] sm:$0xff]  ;;  %v611_v40 = vld [vmem:[%s2391_s12 + $0x348] sm:$0xff] }
 0x111   : > { %1143 = vmatprep.mubr.f32.mxu1 %v549_v41  ;;  %v613_v41 = vld [vmem:[%s2391_s12 + $0x358] sm:$0xff] }
 0x113   : > { %887 = vmatmul.mubr.f32.gmra.mxu0 %v546_v42  ;;  %v610_v42 = vld [vmem:[%s2391_s12 + $0x340] sm:$0xff] }
 0x114   : > { %1144 = vmatmul.mubr.f32.gmra.mxu1 %v548_v43  ;;  %892 = vmatprep.mubr.f32.mxu0 %v551_v44  ;;  %v612_v43 = vld [vmem:[%s2391_s12 + $0x350] sm:$0xff]  ;;  %v615_v44 = vld [vmem:[%s2391_s12 + $0x368] sm:$0xff] }
 0x115   : > { %1149 = vmatprep.mubr.f32.mxu1 %v553_v45  ;;  %v617_v45 = vld [vmem:[%s2391_s12 + $0x378] sm:$0xff] }
 0x117   : > { %893 = vmatmul.mubr.f32.gmra.mxu0 %v550_v46  ;;  %v614_v46 = vld [vmem:[%s2391_s12 + $0x360] sm:$0xff] }
 0x118   : > { %1150 = vmatmul.mubr.f32.gmra.mxu1 %v552_v47  ;;  %898 = vmatprep.mubr.f32.mxu0 %v555_v48  ;;  %v616_v47 = vld [vmem:[%s2391_s12 + $0x370] sm:$0xff]  ;;  %v619_v48 = vld [vmem:[%s2391_s12 + $0x388] sm:$0xff] }
 0x119   : > { %1155 = vmatprep.mubr.f32.mxu1 %v557_v49  ;;  %v621_v49 = vld [vmem:[%s2391_s12 + $0x398] sm:$0xff] }
 0x11b   : > { %899 = vmatmul.mubr.f32.gmra.mxu0 %v554_v50  ;;  %v618_v50 = vld [vmem:[%s2391_s12 + $0x380] sm:$0xff] }
 0x11c   : > { %1156 = vmatmul.mubr.f32.gmra.mxu1 %v556_v51  ;;  %904 = vmatprep.mubr.f32.mxu0 %v559_v52  ;;  %v620_v51 = vld [vmem:[%s2391_s12 + $0x390] sm:$0xff]  ;;  %v623_v52 = vld [vmem:[%s2391_s12 + $0x3a8] sm:$0xff] }
 0x11d   : > { %1161 = vmatprep.mubr.f32.mxu1 %v561_v53  ;;  %v625_v53 = vld [vmem:[%s2391_s12 + $0x3b8] sm:$0xff] }
 0x11f   : > { %905 = vmatmul.mubr.f32.gmra.mxu0 %v558_v54  ;;  %v622_v54 = vld [vmem:[%s2391_s12 + $0x3a0] sm:$0xff] }
 0x120   : > { %1162 = vmatmul.mubr.f32.gmra.mxu1 %v560_v55  ;;  %910 = vmatprep.mubr.f32.mxu0 %v563_v56  ;;  %v624_v55 = vld [vmem:[%s2391_s12 + $0x3b0] sm:$0xff]  ;;  %v627_v56 = vld [vmem:[%s2391_s12 + $0x3c8] sm:$0xff] }
 0x121   : > { %1167 = vmatprep.mubr.f32.mxu1 %v565_v57  ;;  %v629_v57 = vld [vmem:[%s2391_s12 + $0x3d8] sm:$0xff] }
 0x123   : > { %911 = vmatmul.mubr.f32.gmra.mxu0 %v562_v58  ;;  %v626_v58 = vld [vmem:[%s2391_s12 + $0x3c0] sm:$0xff] }
 0x124   : > { %1168 = vmatmul.mubr.f32.gmra.mxu1 %v564_v59  ;;  %916 = vmatprep.mubr.f32.mxu0 %v567_v60  ;;  %v628_v59 = vld [vmem:[%s2391_s12 + $0x3d0] sm:$0xff]  ;;  %v631_v60 = vld [vmem:[%s2391_s12 + $0x3e8] sm:$0xff] }
 0x125   : > { %1173 = vmatprep.mubr.f32.mxu1 %v569_v61  ;;  %v633_v61 = vld [vmem:[%s2391_s12 + $0x3f8] sm:$0xff] }
 0x127   : > { %917 = vmatmul.mubr.f32.gmra.mxu0 %v566_v62  ;;  %v630_v62 = vld [vmem:[%s2391_s12 + $0x3e0] sm:$0xff] }
 0x128   : > { %1174 = vmatmul.mubr.f32.gmra.mxu1 %v568_v63  ;;  %922 = vmatprep.mubr.f32.mxu0 %v571_v0  ;;  %v632_v63 = vld [vmem:[%s2391_s12 + $0x3f0] sm:$0xff] }
 0x129   : > { %1179 = vmatprep.mubr.f32.mxu1 %v573_v1  ;;  %v442_v1 = vld [vmem:[#allocation2 + $0xb0] sm:$0xff] }
 0x12b   : > { %923 = vmatmul.mubr.f32.gmra.mxu0 %v570_v2 }
 0x12c   : > { %1180 = vmatmul.mubr.f32.gmra.mxu1 %v572_v3  ;;  %928 = vmatprep.mubr.f32.mxu0 %v575_v4 }
 0x12d   : > { %1185 = vmatprep.mubr.f32.mxu1 %v577_v5  ;;  %v443_v5 = vld [vmem:[#allocation2 + $0x1b0] sm:$0xff] }
 0x12f   : > { %929 = vmatmul.mubr.f32.gmra.mxu0 %v574_v6 }
 0x130   : > { %1186 = vmatmul.mubr.f32.gmra.mxu1 %v576_v7  ;;  %934 = vmatprep.mubr.f32.mxu0 %v579_v8 }
 0x131   : > { %1191 = vmatprep.mubr.f32.mxu1 %v581_v9 }
 0x133   : > { %935 = vmatmul.mubr.f32.gmra.mxu0 %v578_v10  ;;  %v444_v10 = vld [vmem:[#allocation2 + $0xd8] sm:$0xff] }
 0x134   : > { %1192 = vmatmul.mubr.f32.gmra.mxu1 %v580_v11  ;;  %940 = vmatprep.mubr.f32.mxu0 %v583_v12 }
 0x135   : > { %1197 = vmatprep.mubr.f32.mxu1 %v585_v13 }
 0x137   : > { %941 = vmatmul.mubr.f32.gmra.mxu0 %v582_v14 }
 0x138   : > { %1198 = vmatmul.mubr.f32.gmra.mxu1 %v584_v15  ;;  %946 = vmatprep.mubr.f32.mxu0 %v587_v16  ;;  %v445_v15 = vld [vmem:[#allocation2 + $0x18] sm:$0xff] }
 0x139   : > { %1203 = vmatprep.mubr.f32.mxu1 %v589_v17 }
 0x13b   : > { %947 = vmatmul.mubr.f32.gmra.mxu0 %v586_v18 }
 0x13c   : > { %1204 = vmatmul.mubr.f32.gmra.mxu1 %v588_v19  ;;  %952 = vmatprep.mubr.f32.mxu0 %v591_v20  ;;  %v446_v20 = vld [vmem:[#allocation2 + $0x50] sm:$0xff] }
 0x13d   : > { %1209 = vmatprep.mubr.f32.mxu1 %v593_v21 }
 0x13f   : > { %953 = vmatmul.mubr.f32.gmra.mxu0 %v590_v22 }
 0x140   : > { %1210 = vmatmul.mubr.f32.gmra.mxu1 %v592_v23  ;;  %958 = vmatprep.mubr.f32.mxu0 %v595_v24 }
 0x141   : > { %1215 = vmatprep.mubr.f32.mxu1 %v597_v25  ;;  %v447_v25 = vld [vmem:[#allocation2 + $0x168] sm:$0xff] }
 0x143   : > { %959 = vmatmul.mubr.f32.gmra.mxu0 %v594_v26 }
 0x144   : > { %1216 = vmatmul.mubr.f32.gmra.mxu1 %v596_v27  ;;  %964 = vmatprep.mubr.f32.mxu0 %v599_v28 }
 0x145   : > { %1221 = vmatprep.mubr.f32.mxu1 %v601_v29 }
 0x147   : > { %965 = vmatmul.mubr.f32.gmra.mxu0 %v598_v30  ;;  %v448_v30 = vld [vmem:[#allocation2 + $0x130] sm:$0xff] }
 0x148   : > { %1222 = vmatmul.mubr.f32.gmra.mxu1 %v600_v31  ;;  %970 = vmatprep.mubr.f32.mxu0 %v603_v32 }
 0x149   : > { %1227 = vmatprep.mubr.f32.mxu1 %v605_v33 }
 0x14b   : > { %971 = vmatmul.mubr.f32.gmra.mxu0 %v602_v34 }
 0x14c   : > { %1228 = vmatmul.mubr.f32.gmra.mxu1 %v604_v35  ;;  %976 = vmatprep.mubr.f32.mxu0 %v607_v36  ;;  %v449_v35 = vld [vmem:[#allocation2 + $0x48] sm:$0xff] }
 0x14d   : > { %1233 = vmatprep.mubr.f32.mxu1 %v609_v37 }
 0x14f   : > { %977 = vmatmul.mubr.f32.gmra.mxu0 %v606_v38 }
 0x150   : > { %1234 = vmatmul.mubr.f32.gmra.mxu1 %v608_v39  ;;  %982 = vmatprep.mubr.f32.mxu0 %v611_v40  ;;  %v450_v40 = vld [vmem:[#allocation2 + $0x180] sm:$0xff] }
 0x151   : > { %1239 = vmatprep.mubr.f32.mxu1 %v613_v41 }
 0x153   : > { %983 = vmatmul.mubr.f32.gmra.mxu0 %v610_v42 }
 0x154   : > { %1240 = vmatmul.mubr.f32.gmra.mxu1 %v612_v43  ;;  %988 = vmatprep.mubr.f32.mxu0 %v615_v44 }
 0x155   : > { %1245 = vmatprep.mubr.f32.mxu1 %v617_v45  ;;  %v451_v45 = vld [vmem:[#allocation2 + $0x110] sm:$0xff] }
 0x157   : > { %989 = vmatmul.mubr.f32.gmra.mxu0 %v614_v46 }
 0x158   : > { %1246 = vmatmul.mubr.f32.gmra.mxu1 %v616_v47  ;;  %994 = vmatprep.mubr.f32.mxu0 %v619_v48 }
 0x159   : > { %1251 = vmatprep.mubr.f32.mxu1 %v621_v49 }
 0x15b   : > { %995 = vmatmul.mubr.f32.gmra.mxu0 %v618_v50  ;;  %v452_v50 = vld [vmem:[#allocation2 + $0x118] sm:$0xff] }
 0x15c   : > { %1252 = vmatmul.mubr.f32.gmra.mxu1 %v620_v51  ;;  %1000 = vmatprep.mubr.f32.mxu0 %v623_v52 }
 0x15d   : > { %1257 = vmatprep.mubr.f32.mxu1 %v625_v53 }
 0x15f   : > { %1001 = vmatmul.mubr.f32.gmra.mxu0 %v622_v54 }
 0x160   : > { %1258 = vmatmul.mubr.f32.gmra.mxu1 %v624_v55  ;;  %1006 = vmatprep.mubr.f32.mxu0 %v627_v56  ;;  %v453_v55 = vld [vmem:[#allocation2 + $0x98] sm:$0xff] }
 0x161   : > { %1263 = vmatprep.mubr.f32.mxu1 %v629_v57 }
 0x163   : > { %1007 = vmatmul.mubr.f32.gmra.mxu0 %v626_v58 }
 0x164   : > { %1264 = vmatmul.mubr.f32.gmra.mxu1 %v628_v59  ;;  %1012 = vmatprep.mubr.f32.mxu0 %v631_v60  ;;  %v454_v60 = vld [vmem:[#allocation2 + $0x120] sm:$0xff] }
 0x165   : > { %1269 = vmatprep.mubr.f32.mxu1 %v633_v61 }
 0x167   : > { %1013 = vmatmul.mubr.f32.gmra.mxu0 %v630_v62 }
 0x168   : > { %1270 = vmatmul.mubr.f32.gmra.mxu1 %v632_v63 }
 0x1ab   : > { %v828_v0 = vpop.f32.mrf.mxu0 }
 0x1ac   : > { %v1085_v2 = vpop.f32.mrf.mxu1 }
 0x1ad   : > { %v1086_v3 = vadd.f32 %v1085_v2, %v828_v0  ;;  %v830_v4 = vpop.f32.mrf.mxu0 }
 0x1ae   : > { %v1087_v6 = vpop.f32.mrf.mxu1 }
 0x1af   : > { %v1276_v7 = vadd.f32 %v1086_v3, %v442_v1  ;;  %v1088_v8 = vadd.f32 %v1087_v6, %v830_v4  ;;  %v834_v9 = vpop.f32.mrf.mxu0  ;;  %v455_v1 = vld [vmem:[#allocation2 + $0x150] sm:$0xff]  ;;  %v456_v6 = vld [vmem:[#allocation2 + $0x108] sm:$0xff] }
 0x1b0   : > { %v1091_v11 = vpop.f32.mrf.mxu1 }
 0x1b1   : > { %1340 = vst [vmem:[#allocation2 + $0xb0] sm:$0xff] %v1276_v7  ;;  %v1277_v12 = vadd.f32 %v1088_v8, %v443_v5  ;;  %v1092_v13 = vadd.f32 %v1091_v11, %v834_v9  ;;  %v836_v14 = vpop.f32.mrf.mxu0  ;;  %v457_v11 = vld [vmem:[#allocation2 + $0x60] sm:$0xff] }
 0x1b2   : > { %v1093_v16 = vpop.f32.mrf.mxu1 }
 0x1b3   : > { %1341 = vst [vmem:[#allocation2 + $0x1b0] sm:$0xff] %v1277_v12  ;;  %v1278_v17 = vadd.f32 %v1092_v13, %v444_v10  ;;  %v1094_v18 = vadd.f32 %v1093_v16, %v836_v14  ;;  %v840_v19 = vpop.f32.mrf.mxu0  ;;  %v458_v16 = vld [vmem:[#allocation2 + $0xe0] sm:$0xff] }
 0x1b4   : > { %v1097_v21 = vpop.f32.mrf.mxu1 }
 0x1b5   : > { %1342 = vst [vmem:[#allocation2 + $0xd8] sm:$0xff] %v1278_v17  ;;  %v1279_v22 = vadd.f32 %v1094_v18, %v445_v15  ;;  %v1098_v23 = vadd.f32 %v1097_v21, %v840_v19  ;;  %v842_v24 = vpop.f32.mrf.mxu0  ;;  %v459_v21 = vld [vmem:[#allocation2 + $0x188] sm:$0xff] }
 0x1b6   : > { %v1099_v26 = vpop.f32.mrf.mxu1 }
 0x1b7   : > { %1343 = vst [vmem:[#allocation2 + $0x18] sm:$0xff] %v1279_v22  ;;  %v1280_v27 = vadd.f32 %v1098_v23, %v446_v20  ;;  %v1100_v28 = vadd.f32 %v1099_v26, %v842_v24  ;;  %v846_v29 = vpop.f32.mrf.mxu0  ;;  %v460_v26 = vld [vmem:[#allocation2 + $0x138] sm:$0xff] }
 0x1b8   : > { %v1103_v31 = vpop.f32.mrf.mxu1 }
 0x1b9   : > { %1344 = vst [vmem:[#allocation2 + $0x50] sm:$0xff] %v1280_v27  ;;  %v1281_v32 = vadd.f32 %v1100_v28, %v447_v25  ;;  %v1104_v33 = vadd.f32 %v1103_v31, %v846_v29  ;;  %v848_v34 = vpop.f32.mrf.mxu0  ;;  %v461_v31 = vld [vmem:[#allocation2 + $0x140] sm:$0xff] }
 0x1ba   : > { %v1105_v36 = vpop.f32.mrf.mxu1 }
 0x1bb   : > { %1345 = vst [vmem:[#allocation2 + $0x168] sm:$0xff] %v1281_v32  ;;  %v1282_v37 = vadd.f32 %v1104_v33, %v448_v30  ;;  %v1106_v38 = vadd.f32 %v1105_v36, %v848_v34  ;;  %v852_v39 = vpop.f32.mrf.mxu0  ;;  %v462_v36 = vld [vmem:[#allocation2 + $0x80] sm:$0xff] }
 0x1bc   : > { %v1109_v41 = vpop.f32.mrf.mxu1 }
 0x1bd   : > { %1346 = vst [vmem:[#allocation2 + $0x130] sm:$0xff] %v1282_v37  ;;  %v1283_v42 = vadd.f32 %v1106_v38, %v449_v35  ;;  %v1110_v43 = vadd.f32 %v1109_v41, %v852_v39  ;;  %v854_v44 = vpop.f32.mrf.mxu0  ;;  %v463_v41 = vld [vmem:[#allocation2 + $0x1a8] sm:$0xff] }
 0x1be   : > { %v1111_v46 = vpop.f32.mrf.mxu1 }
 0x1bf   : > { %1347 = vst [vmem:[#allocation2 + $0x48] sm:$0xff] %v1283_v42  ;;  %v1284_v47 = vadd.f32 %v1110_v43, %v450_v40  ;;  %v1112_v48 = vadd.f32 %v1111_v46, %v854_v44  ;;  %v858_v49 = vpop.f32.mrf.mxu0  ;;  %v464_v46 = vld [vmem:[#allocation2 + $0x1b8] sm:$0xff] }
 0x1c0   : > { %v1115_v51 = vpop.f32.mrf.mxu1 }
 0x1c1   : > { %1348 = vst [vmem:[#allocation2 + $0x180] sm:$0xff] %v1284_v47  ;;  %v1285_v52 = vadd.f32 %v1112_v48, %v451_v45  ;;  %v1116_v53 = vadd.f32 %v1115_v51, %v858_v49  ;;  %v860_v54 = vpop.f32.mrf.mxu0  ;;  %v465_v51 = vld [vmem:[#allocation2 + $0x28] sm:$0xff] }
 0x1c2   : > { %v1117_v56 = vpop.f32.mrf.mxu1 }
 0x1c3   : > { %1349 = vst [vmem:[#allocation2 + $0x110] sm:$0xff] %v1285_v52  ;;  %v1286_v57 = vadd.f32 %v1116_v53, %v452_v50  ;;  %v1118_v58 = vadd.f32 %v1117_v56, %v860_v54  ;;  %v864_v59 = vpop.f32.mrf.mxu0  ;;  %v466_v56 = vld [vmem:[#allocation2 + $0x1e8] sm:$0xff] }
 0x1c4   : > { %v1121_v61 = vpop.f32.mrf.mxu1 }
 0x1c5   : > { %1350 = vst [vmem:[#allocation2 + $0x118] sm:$0xff] %v1286_v57  ;;  %v1287_v62 = vadd.f32 %v1118_v58, %v453_v55  ;;  %v1122_v63 = vadd.f32 %v1121_v61, %v864_v59  ;;  %v866_v0 = vpop.f32.mrf.mxu0  ;;  %v467_v61 = vld [vmem:[#allocation2 + $0xf8] sm:$0xff] }
 0x1c6   : > { %v1123_v2 = vpop.f32.mrf.mxu1 }
 0x1c7   : > { %1351 = vst [vmem:[#allocation2 + $0x98] sm:$0xff] %v1287_v62  ;;  %v1288_v3 = vadd.f32 %v1122_v63, %v454_v60  ;;  %v1124_v4 = vadd.f32 %v1123_v2, %v866_v0  ;;  %v870_v5 = vpop.f32.mrf.mxu0  ;;  %v468_v2 = vld [vmem:[#allocation2 + $0x160] sm:$0xff] }
 0x1c8   : > { %v1127_v7 = vpop.f32.mrf.mxu1 }
 0x1c9   : > { %1352 = vst [vmem:[#allocation2 + $0x120] sm:$0xff] %v1288_v3  ;;  %v1289_v8 = vadd.f32 %v1124_v4, %v455_v1  ;;  %v1128_v9 = vadd.f32 %v1127_v7, %v870_v5  ;;  %v872_v10 = vpop.f32.mrf.mxu0  ;;  %v469_v7 = vld [vmem:[#allocation2 + $0x30] sm:$0xff] }
 0x1ca   : > { %v1129_v12 = vpop.f32.mrf.mxu1 }
 0x1cb   : > { %1353 = vst [vmem:[#allocation2 + $0x150] sm:$0xff] %v1289_v8  ;;  %v1290_v13 = vadd.f32 %v1128_v9, %v456_v6  ;;  %v1130_v14 = vadd.f32 %v1129_v12, %v872_v10  ;;  %v876_v15 = vpop.f32.mrf.mxu0  ;;  %v470_v12 = vld [vmem:[#allocation2 + $0x1e0] sm:$0xff] }
 0x1cc   : > { %v1133_v17 = vpop.f32.mrf.mxu1 }
 0x1cd   : > { %1354 = vst [vmem:[#allocation2 + $0x108] sm:$0xff] %v1290_v13  ;;  %v1291_v18 = vadd.f32 %v1130_v14, %v457_v11  ;;  %v1134_v19 = vadd.f32 %v1133_v17, %v876_v15  ;;  %v878_v20 = vpop.f32.mrf.mxu0  ;;  %v471_v17 = vld [vmem:[#allocation2] sm:$0xff] }
 0x1ce   : > { %v1135_v22 = vpop.f32.mrf.mxu1 }
 0x1cf   : > { %1355 = vst [vmem:[#allocation2 + $0x60] sm:$0xff] %v1291_v18  ;;  %v1292_v23 = vadd.f32 %v1134_v19, %v458_v16  ;;  %v1136_v24 = vadd.f32 %v1135_v22, %v878_v20  ;;  %v882_v25 = vpop.f32.mrf.mxu0  ;;  %v472_v22 = vld [vmem:[#allocation2 + $0xf0] sm:$0xff] }
 0x1d0   : > { %v1139_v27 = vpop.f32.mrf.mxu1 }
 0x1d1   : > { %1356 = vst [vmem:[#allocation2 + $0xe0] sm:$0xff] %v1292_v23  ;;  %v1293_v28 = vadd.f32 %v1136_v24, %v459_v21  ;;  %v1140_v29 = vadd.f32 %v1139_v27, %v882_v25  ;;  %v884_v30 = vpop.f32.mrf.mxu0  ;;  %v473_v27 = vld [vmem:[#allocation2 + $0x8] sm:$0xff] }
 0x1d2   : > { %v1141_v32 = vpop.f32.mrf.mxu1 }
 0x1d3   : > { %1357 = vst [vmem:[#allocation2 + $0x188] sm:$0xff] %v1293_v28  ;;  %v1294_v33 = vadd.f32 %v1140_v29, %v460_v26  ;;  %v1142_v34 = vadd.f32 %v1141_v32, %v884_v30  ;;  %v888_v35 = vpop.f32.mrf.mxu0  ;;  %v474_v32 = vld [vmem:[#allocation2 + $0x148] sm:$0xff] }
 0x1d4   : > { %v1145_v37 = vpop.f32.mrf.mxu1 }
 0x1d5   : > { %1358 = vst [vmem:[#allocation2 + $0x138] sm:$0xff] %v1294_v33  ;;  %v1295_v38 = vadd.f32 %v1142_v34, %v461_v31  ;;  %v1146_v39 = vadd.f32 %v1145_v37, %v888_v35  ;;  %v890_v40 = vpop.f32.mrf.mxu0  ;;  %v475_v37 = vld [vmem:[#allocation2 + $0x1d0] sm:$0xff] }
 0x1d6   : > { %v1147_v42 = vpop.f32.mrf.mxu1 }
 0x1d7   : > { %1359 = vst [vmem:[#allocation2 + $0x140] sm:$0xff] %v1295_v38  ;;  %v1296_v43 = vadd.f32 %v1146_v39, %v462_v36  ;;  %v1148_v44 = vadd.f32 %v1147_v42, %v890_v40  ;;  %v894_v45 = vpop.f32.mrf.mxu0  ;;  %v476_v42 = vld [vmem:[#allocation2 + $0x100] sm:$0xff] }
 0x1d8   : > { %v1151_v47 = vpop.f32.mrf.mxu1 }
 0x1d9   : > { %1360 = vst [vmem:[#allocation2 + $0x80] sm:$0xff] %v1296_v43  ;;  %v1297_v48 = vadd.f32 %v1148_v44, %v463_v41  ;;  %v1152_v49 = vadd.f32 %v1151_v47, %v894_v45  ;;  %v896_v50 = vpop.f32.mrf.mxu0  ;;  %v477_v47 = vld [vmem:[#allocation2 + $0xc8] sm:$0xff] }
 0x1da   : > { %v1153_v52 = vpop.f32.mrf.mxu1 }
 0x1db   : > { %1361 = vst [vmem:[#allocation2 + $0x1a8] sm:$0xff] %v1297_v48  ;;  %v1298_v53 = vadd.f32 %v1152_v49, %v464_v46  ;;  %v1154_v54 = vadd.f32 %v1153_v52, %v896_v50  ;;  %v900_v55 = vpop.f32.mrf.mxu0  ;;  %v478_v52 = vld [vmem:[#allocation2 + $0x40] sm:$0xff] }
 0x1dc   : > { %v1157_v57 = vpop.f32.mrf.mxu1 }
 0x1dd   : > { %1362 = vst [vmem:[#allocation2 + $0x1b8] sm:$0xff] %v1298_v53  ;;  %v1299_v58 = vadd.f32 %v1154_v54, %v465_v51  ;;  %v1158_v59 = vadd.f32 %v1157_v57, %v900_v55  ;;  %v902_v60 = vpop.f32.mrf.mxu0  ;;  %v479_v57 = vld [vmem:[#allocation2 + $0x1f8] sm:$0xff] }
 0x1de   : > { %v1159_v62 = vpop.f32.mrf.mxu1 }
 0x1df   : > { %1363 = vst [vmem:[#allocation2 + $0x28] sm:$0xff] %v1299_v58  ;;  %v1300_v63 = vadd.f32 %v1158_v59, %v466_v56  ;;  %v1160_v0 = vadd.f32 %v1159_v62, %v902_v60  ;;  %v906_v1 = vpop.f32.mrf.mxu0  ;;  %v480_v62 = vld [vmem:[#allocation2 + $0x20] sm:$0xff] }
 0x1e0   : > { %v1163_v3 = vpop.f32.mrf.mxu1 }
 0x1e1   : > { %1364 = vst [vmem:[#allocation2 + $0x1e8] sm:$0xff] %v1300_v63  ;;  %v1301_v4 = vadd.f32 %v1160_v0, %v467_v61  ;;  %v1164_v5 = vadd.f32 %v1163_v3, %v906_v1  ;;  %v908_v6 = vpop.f32.mrf.mxu0  ;;  %v481_v3 = vld [vmem:[#allocation2 + $0x128] sm:$0xff] }
 0x1e2   : > { %v1165_v8 = vpop.f32.mrf.mxu1 }
 0x1e3   : > { %1365 = vst [vmem:[#allocation2 + $0xf8] sm:$0xff] %v1301_v4  ;;  %v1302_v9 = vadd.f32 %v1164_v5, %v468_v2  ;;  %v1166_v10 = vadd.f32 %v1165_v8, %v908_v6  ;;  %v912_v11 = vpop.f32.mrf.mxu0  ;;  %v482_v8 = vld [vmem:[#allocation2 + $0x1a0] sm:$0xff] }
 0x1e4   : > { %v1169_v13 = vpop.f32.mrf.mxu1 }
 0x1e5   : > { %1366 = vst [vmem:[#allocation2 + $0x160] sm:$0xff] %v1302_v9  ;;  %v1303_v14 = vadd.f32 %v1166_v10, %v469_v7  ;;  %v1170_v15 = vadd.f32 %v1169_v13, %v912_v11  ;;  %v914_v16 = vpop.f32.mrf.mxu0  ;;  %v483_v13 = vld [vmem:[#allocation2 + $0x1f0] sm:$0xff] }
 0x1e6   : > { %v1171_v18 = vpop.f32.mrf.mxu1 }
 0x1e7   : > { %1367 = vst [vmem:[#allocation2 + $0x30] sm:$0xff] %v1303_v14  ;;  %v1304_v19 = vadd.f32 %v1170_v15, %v470_v12  ;;  %v1172_v20 = vadd.f32 %v1171_v18, %v914_v16  ;;  %v918_v21 = vpop.f32.mrf.mxu0  ;;  %v484_v18 = vld [vmem:[#allocation2 + $0xe8] sm:$0xff] }
 0x1e8   : > { %v1175_v23 = vpop.f32.mrf.mxu1 }
 0x1e9   : > { %1368 = vst [vmem:[#allocation2 + $0x1e0] sm:$0xff] %v1304_v19  ;;  %v1305_v24 = vadd.f32 %v1172_v20, %v471_v17  ;;  %v1176_v25 = vadd.f32 %v1175_v23, %v918_v21  ;;  %v920_v26 = vpop.f32.mrf.mxu0  ;;  %v485_v23 = vld [vmem:[#allocation2 + $0x78] sm:$0xff] }
 0x1ea   : > { %v1177_v28 = vpop.f32.mrf.mxu1 }
 0x1eb   : > { %1369 = vst [vmem:[#allocation2] sm:$0xff] %v1305_v24  ;;  %v1306_v29 = vadd.f32 %v1176_v25, %v472_v22  ;;  %v1178_v30 = vadd.f32 %v1177_v28, %v920_v26  ;;  %v924_v31 = vpop.f32.mrf.mxu0  ;;  %v486_v28 = vld [vmem:[#allocation2 + $0x70] sm:$0xff] }
 0x1ec   : > { %v1181_v33 = vpop.f32.mrf.mxu1 }
 0x1ed   : > { %1370 = vst [vmem:[#allocation2 + $0xf0] sm:$0xff] %v1306_v29  ;;  %v1307_v34 = vadd.f32 %v1178_v30, %v473_v27  ;;  %v1182_v35 = vadd.f32 %v1181_v33, %v924_v31  ;;  %v926_v36 = vpop.f32.mrf.mxu0  ;;  %v487_v33 = vld [vmem:[#allocation2 + $0x90] sm:$0xff] }
 0x1ee   : > { %v1183_v38 = vpop.f32.mrf.mxu1 }
 0x1ef   : > { %1371 = vst [vmem:[#allocation2 + $0x8] sm:$0xff] %v1307_v34  ;;  %v1308_v39 = vadd.f32 %v1182_v35, %v474_v32  ;;  %v1184_v40 = vadd.f32 %v1183_v38, %v926_v36  ;;  %v930_v41 = vpop.f32.mrf.mxu0  ;;  %v488_v38 = vld [vmem:[#allocation2 + $0x1d8] sm:$0xff] }
 0x1f0   : > { %v1187_v43 = vpop.f32.mrf.mxu1 }
 0x1f1   : > { %1372 = vst [vmem:[#allocation2 + $0x148] sm:$0xff] %v1308_v39  ;;  %v1309_v44 = vadd.f32 %v1184_v40, %v475_v37  ;;  %v1188_v45 = vadd.f32 %v1187_v43, %v930_v41  ;;  %v932_v46 = vpop.f32.mrf.mxu0  ;;  %v489_v43 = vld [vmem:[#allocation2 + $0xd0] sm:$0xff] }
 0x1f2   : > { %v1189_v48 = vpop.f32.mrf.mxu1 }
 0x1f3   : > { %1373 = vst [vmem:[#allocation2 + $0x1d0] sm:$0xff] %v1309_v44  ;;  %v1310_v49 = vadd.f32 %v1188_v45, %v476_v42  ;;  %v1190_v50 = vadd.f32 %v1189_v48, %v932_v46  ;;  %v936_v51 = vpop.f32.mrf.mxu0  ;;  %v490_v48 = vld [vmem:[#allocation2 + $0xb8] sm:$0xff] }
 0x1f4   : > { %v1193_v53 = vpop.f32.mrf.mxu1 }
 0x1f5   : > { %1374 = vst [vmem:[#allocation2 + $0x100] sm:$0xff] %v1310_v49  ;;  %v1311_v54 = vadd.f32 %v1190_v50, %v477_v47  ;;  %v1194_v55 = vadd.f32 %v1193_v53, %v936_v51  ;;  %v938_v56 = vpop.f32.mrf.mxu0  ;;  %v491_v53 = vld [vmem:[#allocation2 + $0x88] sm:$0xff] }
 0x1f6   : > { %v1195_v58 = vpop.f32.mrf.mxu1 }
 0x1f7   : > { %1375 = vst [vmem:[#allocation2 + $0xc8] sm:$0xff] %v1311_v54  ;;  %v1312_v59 = vadd.f32 %v1194_v55, %v478_v52  ;;  %v1196_v60 = vadd.f32 %v1195_v58, %v938_v56  ;;  %v942_v61 = vpop.f32.mrf.mxu0  ;;  %v492_v58 = vld [vmem:[#allocation2 + $0xa8] sm:$0xff] }
 0x1f8   : > { %v1199_v63 = vpop.f32.mrf.mxu1 }
 0x1f9   : > { %1376 = vst [vmem:[#allocation2 + $0x40] sm:$0xff] %v1312_v59  ;;  %v1313_v0 = vadd.f32 %v1196_v60, %v479_v57  ;;  %v1200_v1 = vadd.f32 %v1199_v63, %v942_v61  ;;  %v944_v2 = vpop.f32.mrf.mxu0  ;;  %v493_v63 = vld [vmem:[#allocation2 + $0x1c8] sm:$0xff] }
 0x1fa   : > { %v1201_v4 = vpop.f32.mrf.mxu1 }
 0x1fb   : > { %1377 = vst [vmem:[#allocation2 + $0x1f8] sm:$0xff] %v1313_v0  ;;  %v1314_v5 = vadd.f32 %v1200_v1, %v480_v62  ;;  %v1202_v6 = vadd.f32 %v1201_v4, %v944_v2  ;;  %v948_v7 = vpop.f32.mrf.mxu0  ;;  %v494_v4 = vld [vmem:[#allocation2 + $0x170] sm:$0xff] }
 0x1fc   : > { %v1205_v9 = vpop.f32.mrf.mxu1 }
 0x1fd   : > { %1378 = vst [vmem:[#allocation2 + $0x20] sm:$0xff] %v1314_v5  ;;  %v1315_v10 = vadd.f32 %v1202_v6, %v481_v3  ;;  %v1206_v11 = vadd.f32 %v1205_v9, %v948_v7  ;;  %v950_v12 = vpop.f32.mrf.mxu0  ;;  %v495_v9 = vld [vmem:[#allocation2 + $0x178] sm:$0xff] }
 0x1fe   : > { %v1207_v14 = vpop.f32.mrf.mxu1 }
 0x1ff   : > { %1379 = vst [vmem:[#allocation2 + $0x128] sm:$0xff] %v1315_v10  ;;  %v1316_v15 = vadd.f32 %v1206_v11, %v482_v8  ;;  %v1208_v16 = vadd.f32 %v1207_v14, %v950_v12  ;;  %v954_v17 = vpop.f32.mrf.mxu0  ;;  %v496_v14 = vld [vmem:[#allocation2 + $0x68] sm:$0xff] }
 0x200   : > { %v1211_v19 = vpop.f32.mrf.mxu1 }
 0x201   : > { %1380 = vst [vmem:[#allocation2 + $0x1a0] sm:$0xff] %v1316_v15  ;;  %v1317_v20 = vadd.f32 %v1208_v16, %v483_v13  ;;  %v1212_v21 = vadd.f32 %v1211_v19, %v954_v17  ;;  %v956_v22 = vpop.f32.mrf.mxu0  ;;  %v497_v19 = vld [vmem:[#allocation2 + $0x190] sm:$0xff] }
 0x202   : > { %v1213_v24 = vpop.f32.mrf.mxu1 }
 0x203   : > { %1381 = vst [vmem:[#allocation2 + $0x1f0] sm:$0xff] %v1317_v20  ;;  %v1318_v25 = vadd.f32 %v1212_v21, %v484_v18  ;;  %v1214_v26 = vadd.f32 %v1213_v24, %v956_v22  ;;  %v960_v27 = vpop.f32.mrf.mxu0  ;;  %v498_v24 = vld [vmem:[#allocation2 + $0x198] sm:$0xff] }
 0x204   : > { %v1217_v29 = vpop.f32.mrf.mxu1 }
 0x205   : > { %1382 = vst [vmem:[#allocation2 + $0xe8] sm:$0xff] %v1318_v25  ;;  %v1319_v30 = vadd.f32 %v1214_v26, %v485_v23  ;;  %v1218_v31 = vadd.f32 %v1217_v29, %v960_v27  ;;  %v962_v32 = vpop.f32.mrf.mxu0  ;;  %v499_v29 = vld [vmem:[#allocation2 + $0x38] sm:$0xff] }
 0x206   : > { %v1219_v34 = vpop.f32.mrf.mxu1 }
 0x207   : > { %1383 = vst [vmem:[#allocation2 + $0x78] sm:$0xff] %v1319_v30  ;;  %v1320_v35 = vadd.f32 %v1218_v31, %v486_v28  ;;  %v1220_v36 = vadd.f32 %v1219_v34, %v962_v32  ;;  %v966_v37 = vpop.f32.mrf.mxu0  ;;  %v500_v34 = vld [vmem:[#allocation2 + $0xc0] sm:$0xff] }
 0x208   : > { %v1223_v39 = vpop.f32.mrf.mxu1 }
 0x209   : > { %1384 = vst [vmem:[#allocation2 + $0x70] sm:$0xff] %v1320_v35  ;;  %v1321_v40 = vadd.f32 %v1220_v36, %v487_v33  ;;  %v1224_v41 = vadd.f32 %v1223_v39, %v966_v37  ;;  %v968_v42 = vpop.f32.mrf.mxu0  ;;  %v501_v39 = vld [vmem:[#allocation2 + $0x1c0] sm:$0xff] }
 0x20a   : > { %v1225_v44 = vpop.f32.mrf.mxu1 }
 0x20b   : > { %1385 = vst [vmem:[#allocation2 + $0x90] sm:$0xff] %v1321_v40  ;;  %v1322_v45 = vadd.f32 %v1224_v41, %v488_v38  ;;  %v1226_v46 = vadd.f32 %v1225_v44, %v968_v42  ;;  %v972_v47 = vpop.f32.mrf.mxu0  ;;  %v502_v44 = vld [vmem:[#allocation2 + $0x158] sm:$0xff] }
 0x20c   : > { %v1229_v49 = vpop.f32.mrf.mxu1 }
 0x20d   : > { %1386 = vst [vmem:[#allocation2 + $0x1d8] sm:$0xff] %v1322_v45  ;;  %v1323_v50 = vadd.f32 %v1226_v46, %v489_v43  ;;  %v1230_v51 = vadd.f32 %v1229_v49, %v972_v47  ;;  %v974_v52 = vpop.f32.mrf.mxu0  ;;  %v503_v49 = vld [vmem:[#allocation2 + $0x10] sm:$0xff] }
 0x20e   : > { %v1231_v54 = vpop.f32.mrf.mxu1 }
 0x20f   : > { %1387 = vst [vmem:[#allocation2 + $0xd0] sm:$0xff] %v1323_v50  ;;  %v1324_v55 = vadd.f32 %v1230_v51, %v490_v48  ;;  %v1232_v56 = vadd.f32 %v1231_v54, %v974_v52  ;;  %v978_v57 = vpop.f32.mrf.mxu0  ;;  %v504_v54 = vld [vmem:[#allocation2 + $0x58] sm:$0xff] }
 0x210   : > { %v1235_v59 = vpop.f32.mrf.mxu1 }
 0x211   : > { %1388 = vst [vmem:[#allocation2 + $0xb8] sm:$0xff] %v1324_v55  ;;  %v1325_v60 = vadd.f32 %v1232_v56, %v491_v53  ;;  %v1236_v61 = vadd.f32 %v1235_v59, %v978_v57  ;;  %v980_v62 = vpop.f32.mrf.mxu0  ;;  %v505_v59 = vld [vmem:[#allocation2 + $0xa0] sm:$0xff] }
 0x212   : > { %v1237_v0 = vpop.f32.mrf.mxu1 }
 0x213   : > { %1389 = vst [vmem:[#allocation2 + $0x88] sm:$0xff] %v1325_v60  ;;  %v1326_v1 = vadd.f32 %v1236_v61, %v492_v58  ;;  %v1238_v2 = vadd.f32 %v1237_v0, %v980_v62  ;;  %v984_v3 = vpop.f32.mrf.mxu0 }
 0x214   : > { %v1241_v5 = vpop.f32.mrf.mxu1 }
 0x215   : > { %1390 = vst [vmem:[#allocation2 + $0xa8] sm:$0xff] %v1326_v1  ;;  %v1327_v6 = vadd.f32 %v1238_v2, %v493_v63  ;;  %v1242_v7 = vadd.f32 %v1241_v5, %v984_v3  ;;  %v986_v8 = vpop.f32.mrf.mxu0 }
 0x216   : > { %v1243_v10 = vpop.f32.mrf.mxu1 }
 0x217   : > { %1391 = vst [vmem:[#allocation2 + $0x1c8] sm:$0xff] %v1327_v6  ;;  %v1328_v11 = vadd.f32 %v1242_v7, %v494_v4  ;;  %v1244_v12 = vadd.f32 %v1243_v10, %v986_v8  ;;  %v990_v13 = vpop.f32.mrf.mxu0 }
 0x218   : > { %v1247_v15 = vpop.f32.mrf.mxu1 }
 0x219   : > { %1392 = vst [vmem:[#allocation2 + $0x170] sm:$0xff] %v1328_v11  ;;  %v1329_v16 = vadd.f32 %v1244_v12, %v495_v9  ;;  %v1248_v17 = vadd.f32 %v1247_v15, %v990_v13  ;;  %v992_v18 = vpop.f32.mrf.mxu0 }
 0x21a   : > { %v1249_v20 = vpop.f32.mrf.mxu1 }
 0x21b   : > { %1393 = vst [vmem:[#allocation2 + $0x178] sm:$0xff] %v1329_v16  ;;  %v1330_v21 = vadd.f32 %v1248_v17, %v496_v14  ;;  %v1250_v22 = vadd.f32 %v1249_v20, %v992_v18  ;;  %v996_v23 = vpop.f32.mrf.mxu0 }
 0x21c   : > { %v1253_v25 = vpop.f32.mrf.mxu1 }
 0x21d   : > { %1394 = vst [vmem:[#allocation2 + $0x68] sm:$0xff] %v1330_v21  ;;  %v1331_v26 = vadd.f32 %v1250_v22, %v497_v19  ;;  %v1254_v27 = vadd.f32 %v1253_v25, %v996_v23  ;;  %v998_v28 = vpop.f32.mrf.mxu0 }
 0x21e   : > { %v1255_v30 = vpop.f32.mrf.mxu1 }
 0x21f   : > { %1395 = vst [vmem:[#allocation2 + $0x190] sm:$0xff] %v1331_v26  ;;  %v1332_v31 = vadd.f32 %v1254_v27, %v498_v24  ;;  %v1256_v32 = vadd.f32 %v1255_v30, %v998_v28  ;;  %v1002_v33 = vpop.f32.mrf.mxu0 }
 0x220   : > { %v1259_v35 = vpop.f32.mrf.mxu1 }
 0x221   : > { %1396 = vst [vmem:[#allocation2 + $0x198] sm:$0xff] %v1332_v31  ;;  %v1333_v36 = vadd.f32 %v1256_v32, %v499_v29  ;;  %v1260_v37 = vadd.f32 %v1259_v35, %v1002_v33  ;;  %v1004_v38 = vpop.f32.mrf.mxu0 }
 0x222   : > { %v1261_v40 = vpop.f32.mrf.mxu1 }
 0x223   : > { %1397 = vst [vmem:[#allocation2 + $0x38] sm:$0xff] %v1333_v36  ;;  %v1334_v41 = vadd.f32 %v1260_v37, %v500_v34  ;;  %v1262_v42 = vadd.f32 %v1261_v40, %v1004_v38  ;;  %v1008_v43 = vpop.f32.mrf.mxu0 }
 0x224   : > { %v1265_v45 = vpop.f32.mrf.mxu1 }
 0x225   : > { %1398 = vst [vmem:[#allocation2 + $0xc0] sm:$0xff] %v1334_v41  ;;  %v1335_v46 = vadd.f32 %v1262_v42, %v501_v39  ;;  %v1266_v47 = vadd.f32 %v1265_v45, %v1008_v43  ;;  %v1010_v48 = vpop.f32.mrf.mxu0 }
 0x226   : > { %v1267_v50 = vpop.f32.mrf.mxu1 }
 0x227   : > { %1399 = vst [vmem:[#allocation2 + $0x1c0] sm:$0xff] %v1335_v46  ;;  %v1336_v51 = vadd.f32 %v1266_v47, %v502_v44  ;;  %v1268_v52 = vadd.f32 %v1267_v50, %v1010_v48  ;;  %v1014_v53 = vpop.f32.mrf.mxu0 }
 0x228   : > { %v1271_v55 = vpop.f32.mrf.mxu1 }
 0x229   : > { %1400 = vst [vmem:[#allocation2 + $0x158] sm:$0xff] %v1336_v51  ;;  %v1337_v56 = vadd.f32 %v1268_v52, %v503_v49  ;;  %v1272_v57 = vadd.f32 %v1271_v55, %v1014_v53  ;;  %v1016_v58 = vpop.f32.mrf.mxu0 }
 0x22a   : > { %v1273_v60 = vpop.f32.mrf.mxu1 }
 0x22b   : > { %1401 = vst [vmem:[#allocation2 + $0x10] sm:$0xff] %v1337_v56  ;;  %v1338_v61 = vadd.f32 %v1272_v57, %v504_v54  ;;  %v1274_v62 = vadd.f32 %v1273_v60, %v1016_v58  ;;  %1407 = sbr.rel (%p1716_p6) target bundleno = 593 (0x251), region = 52 }
 0x22d   : > { %1402 = vst [vmem:[#allocation2 + $0x58] sm:$0xff] %v1338_v61  ;;  %v1339_v63 = vadd.f32 %v1274_v62, %v505_v59 }
 0x22f   : > { %1403 = vst [vmem:[#allocation2 + $0xa0] sm:$0xff] %v1339_v63 }
 0x230   : > { %v1408_v0 = vld [vmem:[#allocation2 + $0xb0] sm:$0xff]  ;;  %v1410_v2 = vld [vmem:[#allocation2 + $0xd8] sm:$0xff]  ;;  %v1413_v5 = vld [vmem:[#allocation2 + $0x168] sm:$0xff] }
 0x231   : > { %v1409_v1 = vld [vmem:[#allocation2 + $0x1b0] sm:$0xff]  ;;  %1472 = vst [vmem:[%s2404_s26] sm:$0xff] %v1408_v0  ;;  %1474 = vst [vmem:[%s2404_s26 + $0x10] sm:$0xff] %v1410_v2  ;;  %v1411_v3 = vld [vmem:[#allocation2 + $0x18] sm:$0xff] }
 0x232   : > { %1473 = vst [vmem:[%s2404_s26 + $0x8] sm:$0xff] %v1409_v1  ;;  %v1412_v4 = vld [vmem:[#allocation2 + $0x50] sm:$0xff]  ;;  %1475 = vst [vmem:[%s2404_s26 + $0x18] sm:$0xff] %v1411_v3  ;;  %v1415_v7 = vld [vmem:[#allocation2 + $0x48] sm:$0xff] }
 0x233   : > { %1476 = vst [vmem:[%s2404_s26 + $0x20] sm:$0xff] %v1412_v4  ;;  %1477 = vst [vmem:[%s2404_s26 + $0x28] sm:$0xff] %v1413_v5  ;;  %v1414_v6 = vld [vmem:[#allocation2 + $0x130] sm:$0xff]  ;;  %v1416_v8 = vld [vmem:[#allocation2 + $0x180] sm:$0xff] }
 0x234   : > { %1478 = vst [vmem:[%s2404_s26 + $0x30] sm:$0xff] %v1414_v6  ;;  %1479 = vst [vmem:[%s2404_s26 + $0x38] sm:$0xff] %v1415_v7  ;;  %v1417_v9 = vld [vmem:[#allocation2 + $0x110] sm:$0xff]  ;;  %v1418_v10 = vld [vmem:[#allocation2 + $0x118] sm:$0xff] }
 0x235   : > { %1480 = vst [vmem:[%s2404_s26 + $0x40] sm:$0xff] %v1416_v8  ;;  %v1419_v11 = vld [vmem:[#allocation2 + $0x98] sm:$0xff]  ;;  %1481 = vst [vmem:[%s2404_s26 + $0x48] sm:$0xff] %v1417_v9  ;;  %v1420_v12 = vld [vmem:[#allocation2 + $0x120] sm:$0xff] }
 0x236   : > { %1482 = vst [vmem:[%s2404_s26 + $0x50] sm:$0xff] %v1418_v10  ;;  %1483 = vst [vmem:[%s2404_s26 + $0x58] sm:$0xff] %v1419_v11  ;;  %v1421_v13 = vld [vmem:[#allocation2 + $0x150] sm:$0xff]  ;;  %v1422_v14 = vld [vmem:[#allocation2 + $0x108] sm:$0xff] }
 0x237   : > { %1484 = vst [vmem:[%s2404_s26 + $0x60] sm:$0xff] %v1420_v12  ;;  %1485 = vst [vmem:[%s2404_s26 + $0x68] sm:$0xff] %v1421_v13  ;;  %v1423_v15 = vld [vmem:[#allocation2 + $0x60] sm:$0xff]  ;;  %v1425_v17 = vld [vmem:[#allocation2 + $0x188] sm:$0xff] }
 0x238   : > { %1486 = vst [vmem:[%s2404_s26 + $0x70] sm:$0xff] %v1422_v14  ;;  %v1424_v16 = vld [vmem:[#allocation2 + $0xe0] sm:$0xff]  ;;  %1487 = vst [vmem:[%s2404_s26 + $0x78] sm:$0xff] %v1423_v15  ;;  %v1426_v18 = vld [vmem:[#allocation2 + $0x138] sm:$0xff] }
 0x239   : > { %1488 = vst [vmem:[%s2404_s26 + $0x80] sm:$0xff] %v1424_v16  ;;  %1489 = vst [vmem:[%s2404_s26 + $0x88] sm:$0xff] %v1425_v17  ;;  %v1427_v19 = vld [vmem:[#allocation2 + $0x140] sm:$0xff]  ;;  %v1429_v21 = vld [vmem:[#allocation2 + $0x1a8] sm:$0xff] }
 0x23a   : > { %v1428_v20 = vld [vmem:[#allocation2 + $0x80] sm:$0xff]  ;;  %1490 = vst [vmem:[%s2404_s26 + $0x90] sm:$0xff] %v1426_v18  ;;  %1491 = vst [vmem:[%s2404_s26 + $0x98] sm:$0xff] %v1427_v19  ;;  %v1430_v22 = vld [vmem:[#allocation2 + $0x1b8] sm:$0xff] }
 0x23b   : > { %1492 = vst [vmem:[%s2404_s26 + $0xa0] sm:$0xff] %v1428_v20  ;;  %v1431_v23 = vld [vmem:[#allocation2 + $0x28] sm:$0xff]  ;;  %1493 = vst [vmem:[%s2404_s26 + $0xa8] sm:$0xff] %v1429_v21  ;;  %v1433_v25 = vld [vmem:[#allocation2 + $0xf8] sm:$0xff] }
 0x23c   : > { %1494 = vst [vmem:[%s2404_s26 + $0xb0] sm:$0xff] %v1430_v22  ;;  %1495 = vst [vmem:[%s2404_s26 + $0xb8] sm:$0xff] %v1431_v23  ;;  %v1432_v24 = vld [vmem:[#allocation2 + $0x1e8] sm:$0xff]  ;;  %v1434_v26 = vld [vmem:[#allocation2 + $0x160] sm:$0xff] }
 0x23d   : > { %1496 = vst [vmem:[%s2404_s26 + $0xc0] sm:$0xff] %v1432_v24  ;;  %1497 = vst [vmem:[%s2404_s26 + $0xc8] sm:$0xff] %v1433_v25  ;;  %v1435_v27 = vld [vmem:[#allocation2 + $0x30] sm:$0xff]  ;;  %v1436_v28 = vld [vmem:[#allocation2 + $0x1e0] sm:$0xff] }
 0x23e   : > { %1498 = vst [vmem:[%s2404_s26 + $0xd0] sm:$0xff] %v1434_v26  ;;  %v1437_v29 = vld [vmem:[#allocation2] sm:$0xff]  ;;  %1499 = vst [vmem:[%s2404_s26 + $0xd8] sm:$0xff] %v1435_v27  ;;  %v1438_v30 = vld [vmem:[#allocation2 + $0xf0] sm:$0xff] }
 0x23f   : > { %1500 = vst [vmem:[%s2404_s26 + $0xe0] sm:$0xff] %v1436_v28  ;;  %1501 = vst [vmem:[%s2404_s26 + $0xe8] sm:$0xff] %v1437_v29  ;;  %v1439_v31 = vld [vmem:[#allocation2 + $0x8] sm:$0xff]  ;;  %v1441_v33 = vld [vmem:[#allocation2 + $0x1d0] sm:$0xff] }
 0x240   : > { %v1440_v32 = vld [vmem:[#allocation2 + $0x148] sm:$0xff]  ;;  %1502 = vst [vmem:[%s2404_s26 + $0xf0] sm:$0xff] %v1438_v30  ;;  %1503 = vst [vmem:[%s2404_s26 + $0xf8] sm:$0xff] %v1439_v31  ;;  %v1442_v34 = vld [vmem:[#allocation2 + $0x100] sm:$0xff] }
 0x241   : > { %1504 = vst [vmem:[%s2404_s26 + $0x100] sm:$0xff] %v1440_v32  ;;  %v1443_v35 = vld [vmem:[#allocation2 + $0xc8] sm:$0xff]  ;;  %1505 = vst [vmem:[%s2404_s26 + $0x108] sm:$0xff] %v1441_v33  ;;  %v1444_v36 = vld [vmem:[#allocation2 + $0x40] sm:$0xff] }
 0x242   : > { %1506 = vst [vmem:[%s2404_s26 + $0x110] sm:$0xff] %v1442_v34  ;;  %1507 = vst [vmem:[%s2404_s26 + $0x118] sm:$0xff] %v1443_v35  ;;  %v1445_v37 = vld [vmem:[#allocation2 + $0x1f8] sm:$0xff]  ;;  %v1446_v38 = vld [vmem:[#allocation2 + $0x20] sm:$0xff] }
 0x243   : > { %1508 = vst [vmem:[%s2404_s26 + $0x120] sm:$0xff] %v1444_v36  ;;  %1509 = vst [vmem:[%s2404_s26 + $0x128] sm:$0xff] %v1445_v37  ;;  %v1447_v39 = vld [vmem:[#allocation2 + $0x128] sm:$0xff]  ;;  %v1448_v40 = vld [vmem:[#allocation2 + $0x1a0] sm:$0xff] }
 0x244   : > { %1510 = vst [vmem:[%s2404_s26 + $0x130] sm:$0xff] %v1446_v38  ;;  %v1449_v41 = vld [vmem:[#allocation2 + $0x1f0] sm:$0xff]  ;;  %1511 = vst [vmem:[%s2404_s26 + $0x138] sm:$0xff] %v1447_v39  ;;  %v1450_v42 = vld [vmem:[#allocation2 + $0xe8] sm:$0xff] }
 0x245   : > { %1512 = vst [vmem:[%s2404_s26 + $0x140] sm:$0xff] %v1448_v40  ;;  %1513 = vst [vmem:[%s2404_s26 + $0x148] sm:$0xff] %v1449_v41  ;;  %v1451_v43 = vld [vmem:[#allocation2 + $0x78] sm:$0xff]  ;;  %v1452_v44 = vld [vmem:[#allocation2 + $0x70] sm:$0xff] }
 0x246   : > { %1514 = vst [vmem:[%s2404_s26 + $0x150] sm:$0xff] %v1450_v42  ;;  %1515 = vst [vmem:[%s2404_s26 + $0x158] sm:$0xff] %v1451_v43  ;;  %v1453_v45 = vld [vmem:[#allocation2 + $0x90] sm:$0xff]  ;;  %v1454_v46 = vld [vmem:[#allocation2 + $0x1d8] sm:$0xff] }
 0x247   : > { %1516 = vst [vmem:[%s2404_s26 + $0x160] sm:$0xff] %v1452_v44  ;;  %v1455_v47 = vld [vmem:[#allocation2 + $0xd0] sm:$0xff]  ;;  %1517 = vst [vmem:[%s2404_s26 + $0x168] sm:$0xff] %v1453_v45  ;;  %v1456_v48 = vld [vmem:[#allocation2 + $0xb8] sm:$0xff] }
 0x248   : > { %1518 = vst [vmem:[%s2404_s26 + $0x170] sm:$0xff] %v1454_v46  ;;  %1519 = vst [vmem:[%s2404_s26 + $0x178] sm:$0xff] %v1455_v47  ;;  %v1457_v49 = vld [vmem:[#allocation2 + $0x88] sm:$0xff]  ;;  %v1460_v52 = vld [vmem:[#allocation2 + $0x170] sm:$0xff] }
 0x249   : > { %v1458_v50 = vld [vmem:[#allocation2 + $0xa8] sm:$0xff]  ;;  %1520 = vst [vmem:[%s2404_s26 + $0x180] sm:$0xff] %v1456_v48  ;;  %1521 = vst [vmem:[%s2404_s26 + $0x188] sm:$0xff] %v1457_v49  ;;  %v1461_v53 = vld [vmem:[#allocation2 + $0x178] sm:$0xff] }
 0x24a   : > { %1522 = vst [vmem:[%s2404_s26 + $0x190] sm:$0xff] %v1458_v50  ;;  %v1459_v51 = vld [vmem:[#allocation2 + $0x1c8] sm:$0xff]  ;;  %1524 = vst [vmem:[%s2404_s26 + $0x1a0] sm:$0xff] %v1460_v52  ;;  %v1463_v55 = vld [vmem:[#allocation2 + $0x190] sm:$0xff] }
 0x24b   : > { %1523 = vst [vmem:[%s2404_s26 + $0x198] sm:$0xff] %v1459_v51  ;;  %1525 = vst [vmem:[%s2404_s26 + $0x1a8] sm:$0xff] %v1461_v53  ;;  %v1462_v54 = vld [vmem:[#allocation2 + $0x68] sm:$0xff]  ;;  %v1464_v56 = vld [vmem:[#allocation2 + $0x198] sm:$0xff] }
 0x24c   : > { %1526 = vst [vmem:[%s2404_s26 + $0x1b0] sm:$0xff] %v1462_v54  ;;  %1527 = vst [vmem:[%s2404_s26 + $0x1b8] sm:$0xff] %v1463_v55  ;;  %v1465_v57 = vld [vmem:[#allocation2 + $0x38] sm:$0xff]  ;;  %v1466_v58 = vld [vmem:[#allocation2 + $0xc0] sm:$0xff] }
 0x24d   : > { %1528 = vst [vmem:[%s2404_s26 + $0x1c0] sm:$0xff] %v1464_v56  ;;  %v1467_v59 = vld [vmem:[#allocation2 + $0x1c0] sm:$0xff]  ;;  %1529 = vst [vmem:[%s2404_s26 + $0x1c8] sm:$0xff] %v1465_v57  ;;  %v1468_v60 = vld [vmem:[#allocation2 + $0x158] sm:$0xff] }
 0x24e   : > { %1530 = vst [vmem:[%s2404_s26 + $0x1d0] sm:$0xff] %v1466_v58  ;;  %1531 = vst [vmem:[%s2404_s26 + $0x1d8] sm:$0xff] %v1467_v59  ;;  %v1469_v61 = vld [vmem:[#allocation2 + $0x10] sm:$0xff]  ;;  %v1470_v62 = vld [vmem:[#allocation2 + $0x58] sm:$0xff] }
 0x24f   : > { %1532 = vst [vmem:[%s2404_s26 + $0x1e0] sm:$0xff] %v1468_v60  ;;  %1533 = vst [vmem:[%s2404_s26 + $0x1e8] sm:$0xff] %v1469_v61  ;;  %v1471_v63 = vld [vmem:[#allocation2 + $0xa0] sm:$0xff] }
 0x250   : > { %1534 = vst [vmem:[%s2404_s26 + $0x1f0] sm:$0xff] %v1470_v62  ;;  %1535 = vst [vmem:[%s2404_s26 + $0x1f8] sm:$0xff] %v1471_v63 }
 0x251 PF: > { %s2933_s30 = sld [smem:[#allocation17_spill]]  ;;  %s1553_s3 = sshll.u32 %s2404_s26, 4  ;;  %s2799_s3 = int_to_ptr.vmem [resolvable:$true] %s1553_s3 }
 0x252   : > { %s2934_s17 = sld [smem:[#allocation22_spill]]  ;;  %s1537_s9 = scalar_lea.sflag [#allocation5], %s2379_s16 }
 0x253   : > { %s2935_s21 = sld [smem:[#allocation25_spill]]  ;;  %s1954_s28 = scalar_lea.vmem %s2799_s3, 8192 }
 0x254   : > { %p1955_p0 = scmp.ne.s32.totalorder %s2799_s3, %s1954_s28  ;;  %s2116_s12 = smov [#allocation9]  }
 0x255   : > { %s1958_s0 = sshll.u32 %s2116_s12, 4  ;;  %s1959_s0 = int_to_ptr.vmem [resolvable:$false] %s1958_s0 }
 0x256   : > { %s1960_s10 = scalar_lea.vmem %s1959_s0, 16384  ;;  %p1961_p4 = scmp.lt.s32.totalorder %s2799_s3, %s1959_s0 }
 0x257   : > { %s1725_s7 = sshll.u32 %s2933_s30, 8  ;;  %p1962_p10 = scmp.lt.s32.totalorder %s1960_s10, %s1954_s28 }
 0x258   : > { %p2937_p9 = scmp.ne.s32.totalorder %s2934_s17, 0 }
 0x259   : > { %s2936_s5 = smov %s2935_s21  ;;  %s2796_s11 = scalar_lea.hbm %s2935_s21, %s1725_s7 }
 0x25a   : > { %p1956_p1 = pnand %p1955_p0, %p2937_p9  ;;  %p1963_p11 = por %p1962_p10, %p1961_p4 }
 0x25c   : > { %p1957_p13 = pneg %p1956_p1 }
 0x25e   : > { %p1964_p2 = pnand %p1963_p11, %p1957_p13 }
 0x260   : > { %1967 = shalt.err (!%p1964_p2)
}
 0x261   : > { %s1968_s22 = scalar_lea.hbm %s2796_s11, 8192  ;;  %s1972_s4 = scalar_lea.hbm %s2936_s5, 16384 }
 0x262   : > { %p1969_p7 = scmp.ne.s32.totalorder %s2796_s11, %s1968_s22  ;;  %p1973_p8 = scmp.lt.s32.totalorder %s2796_s11, %s2936_s5 }
 0x263   : > { %p1974_p12 = scmp.lt.s32.totalorder %s1972_s4, %s1968_s22 }
 0x264   : > { %p1970_p5 = pnand %p1969_p7, %p2937_p9 }
 0x265   : > { %p1975_p6 = por %p1974_p12, %p1973_p8 }
 0x266   : > { %p1971_p3 = pneg %p1970_p5 }
 0x268   : > { %p1976_p0 = pnand %p1975_p6, %p1971_p3 }
 0x26a   : > { %1979 = shalt.err (!%p1976_p0)
}
 0x26b   : > { %s2117_s29 = smov 256   ;;  %s2118_s15 = smov 512  }
 0x26c   : > { %s2119_s21 = smov 16  }
 0x26d   : > { %1732 = dma.vmem_to_hbm [thread:$0]  (%p2937_p9), %s2799_s3, 8192, %s2796_s11, %s1537_s9, %s2117_s29, %s2118_s15, %s2119_s21  }
 0x26e PF: > { %p1749_p1 = scmp.ge.s32.totalorder %s2106_s25, 2  ;;  %s1568_s28 = sand.u32 1, %s2078_s18  }
 0x26f   : > { %p2938_p13 = scmp.ne.s32.totalorder %s2918_s6, 0  ;;  %s1569_s12 = scalar_lea.sflag [#allocation5], %s1568_s28 }
 0x271   : > { %p1745_p4 = pnand %p1749_p1, %p2938_p13 }
 0x273   : > { %p1746_p10 = pneg %p1745_p4 }
 0x275   : > { %2049 = dma.done.wait (%p1746_p10), %s1569_s12, 8192  }
 0x276   : > { %2051 = vsyncadd (%p1746_p10), %s1569_s12, 4294959104  ;;  %s22_s25 = sadd.s32 1, %s2106_s25   ;;  %s2940_s15 = sld [smem:[#allocation14_spill]] }
 0x277   : > { %p2829_p11 = scmp.ge.s32.totalorder %s22_s25, 6   ;;  %s2941_s16 = sld [smem:[#allocation15_spill]] }
 0x278   : > { %s2942_s17 = sld [smem:[#allocation20_spill]]  ;;  %s2945_s12 = smov %s2058_s13 }
 0x279   : > { %s2943_s6 = sld [smem:[#allocation18_spill]]  ;;  %s2946_s13 = smov %s2062_s14 }
 0x27a   : > { %s2944_s11 = sld [smem:[#allocation21_spill]]  ;;  %s2947_s14 = smov %s2342_s8 }
 0x27b   : > { %s2948_s18 = smov %s2082_s19  ;;  %s2949_s19 = smov %s2086_s20 }
 0x27c   : > { %s2950_s20 = smov %s2317_s1  ;;  %s2951_s21 = smov %s2098_s23 }
 0x27d   : > { %s2952_s22 = smov %s2102_s24  ;;  %21 = sbr.rel (!%p2829_p11) target bundleno = 16 (0x10), region = 109 }
 0x27f   : > { %s2953_s23 = smov %s2943_s6 }
 0x280   : > { %s2954_s24 = smov %s2944_s11 }
 0x282   :  { %1574 = vsyncpa [#allocation4], 1 }
 0x283   :  { %1576 = vsyncpa [#allocation4 + $0x1], 1 }
 0x284   :  { %1577 = vsyncpa [#allocation7], 1 }
 0x285   :  { %1579 = vsyncpa [#allocation7 + $0x1], 1 }
 0x286   :  { %1580 = vsyncpa [#allocation5], 1 }
 0x287   :  { %1582 = vsyncpa [#allocation5 + $0x1], 1 }

</bundles_post_ra>
